<compile_context>
chip_gen: v6e
topology: v6e:2x2x1
jax: 0.10.0
libtpu: 0.0.40
codegen_flags: <defaults>
</compile_context>

<pallas_src>
import jax
import jax.numpy as jnp
from jax.experimental import pallas as pl
from jax.experimental.pallas import tpu as pltpu  # noqa: F401  (TPU backend)

INPUT_DIM = 12
HIDDEN_DIM = 45
NUM_LAYERS = 10
OUTPUT_DIM = 4
OUT_PAD = 128          # lane-dense output slab width
BN_EPS = 1e-5


def pinn_kernel(x_ref, w_in_ref, w_h_ref, gamma_ref, beta_ref,
                w_out_ref, b_out_ref, o_ref):
    batch = x_ref.shape[0]
    inv_b = jnp.float32(1.0 / batch)

    def bn_relu(h, gamma, beta):
        # One-pass batch stats: E[h] and E[h^2] (independent reductions),
        # biased variance, folded into a single affine, then ReLU.
        s1 = jnp.sum(h, axis=0, keepdims=True)
        s2 = jnp.sum(h * h, axis=0, keepdims=True)
        mean = s1 * inv_b
        var = s2 * inv_b - mean * mean
        scale = gamma * jax.lax.rsqrt(var + BN_EPS)   # EUP slot
        shift = beta - mean * scale
        return jnp.maximum(h * scale + shift, 0.0)

    # Input layer.  Linear bias dropped: it is exactly cancelled by the
    # training-mode BatchNorm mean subtraction.
    h = jnp.dot(x_ref[...], w_in_ref[...], preferred_element_type=jnp.float32)
    h = bn_relu(h, gamma_ref[0], beta_ref[0])

    # Hidden layers (static unroll; all weights resident in VMEM).
    for l in range(NUM_LAYERS):
        h = jnp.dot(h, w_h_ref[l], preferred_element_type=jnp.float32)
        h = bn_relu(h, gamma_ref[l + 1], beta_ref[l + 1])

    # Output layer (no BN / ReLU).  w_out / b_out are zero-padded to OUT_PAD
    # lanes so the store is a single unmasked vst per 8 rows.
    o_ref[...] = (jnp.dot(h, w_out_ref[...], preferred_element_type=jnp.float32)
                  + b_out_ref[...]).astype(o_ref.dtype)


def _full_spec(a):
    # Whole array resident in VMEM, no grid.
    return pl.BlockSpec(a.shape, lambda: (0,) * a.ndim)


@jax.jit
def quadrotor_pinn_forward(x, params):
    batch = x.shape[0]

    # Zero-pad the output projection to a full 128-lane slab (tiny traced op
    # on tiny weights; enables an unmasked output store inside the kernel).
    w_out_p = jnp.pad(params["w_out"], ((0, 0), (0, OUT_PAD - OUTPUT_DIM)))
    b_out_p = jnp.pad(params["b_out"], ((0, 0), (0, OUT_PAD - OUTPUT_DIM)))

    args = (x,
            params["w_in"],
            params["w_h"],
            params["gamma"], params["beta"],
            w_out_p, b_out_p)

    out_pad = pl.pallas_call(
        pinn_kernel,
        out_shape=jax.ShapeDtypeStruct((batch, OUT_PAD), jnp.float32),
        in_specs=[_full_spec(a) for a in args],
        out_specs=pl.BlockSpec((batch, OUT_PAD), lambda: (0, 0)),
    )(*args)
    return out_pad[:, :OUTPUT_DIM]


def xavier_uniform(key, fan_in, fan_out):
    limit = (6.0 / (fan_in + fan_out)) ** 0.5
    return jax.random.uniform(key, (fan_in, fan_out), jnp.float32,
                              minval=-limit, maxval=limit)


def init_params(key):
    keys = jax.random.split(key, NUM_LAYERS + 2)
    w_in = xavier_uniform(keys[0], INPUT_DIM, HIDDEN_DIM)
    w_h = jnp.stack([xavier_uniform(keys[1 + l], HIDDEN_DIM, HIDDEN_DIM)
                     for l in range(NUM_LAYERS)], axis=0)
    w_out = xavier_uniform(keys[NUM_LAYERS + 1], HIDDEN_DIM, OUTPUT_DIM)
    return {
        "w_in": w_in,
        # b_in / b_h kept for module fidelity (zeros per the PyTorch init);
        # they are mathematically cancelled by the following BatchNorm and
        # therefore never passed to the kernel.
        "b_in": jnp.zeros((1, HIDDEN_DIM), jnp.float32),
        "w_h": w_h,
        "b_h": jnp.zeros((NUM_LAYERS, 1, HIDDEN_DIM), jnp.float32),
        # BatchNorm affine params (gamma=1, beta=0 at init), one per BN layer.
        "gamma": jnp.ones((NUM_LAYERS + 1, 1, HIDDEN_DIM), jnp.float32),
        "beta": jnp.zeros((NUM_LAYERS + 1, 1, HIDDEN_DIM), jnp.float32),
        "w_out": w_out,
        "b_out": jnp.zeros((1, OUTPUT_DIM), jnp.float32),
    }


def reference_forward(x, params):
    """Pure-JAX reference of the PyTorch forward (training-mode BN)."""
    def bn_relu(h, gamma, beta):
        mean = jnp.mean(h, axis=0, keepdims=True)
        var = jnp.mean((h - mean) ** 2, axis=0, keepdims=True)
        h_hat = (h - mean) * jax.lax.rsqrt(var + BN_EPS)
        return jnp.maximum(h_hat * gamma + beta, 0.0)

    h = x @ params["w_in"] + params["b_in"]
    h = bn_relu(h, params["gamma"][0], params["beta"][0])
    for l in range(NUM_LAYERS):
        h = h @ params["w_h"][l] + params["b_h"][l]
        h = bn_relu(h, params["gamma"][l + 1], params["beta"][l + 1])
    return h @ params["w_out"] + params["b_out"]


if __name__ == "__main__":
    key = jax.random.PRNGKey(0)
    kx, kp = jax.random.split(key)
    batch = 8  # multiple of 8 keeps f32 sublane tiling clean
    x = jax.random.normal(kx, (batch, INPUT_DIM), jnp.float32)
    params = init_params(kp)

    out = quadrotor_pinn_forward(x, params)
    out = jax.block_until_ready(out)

    ref = reference_forward(x, params)
    assert out.shape == (batch, OUTPUT_DIM)
    assert jnp.allclose(out, ref, atol=1e-4, rtol=1e-4), "mismatch vs reference"

    print("KERNEL_OK")
</pallas_src>

<mosaic_0001>
module attributes {stable_mosaic.version = 11 : i64} {
  func.func @pinn_kernel(%arg0: memref<8x12xf32, #tpu.memory_space<vmem>>, %arg1: memref<12x45xf32, #tpu.memory_space<vmem>>, %arg2: memref<10x45x45xf32, #tpu.memory_space<vmem>>, %arg3: memref<11x1x45xf32, #tpu.memory_space<vmem>>, %arg4: memref<11x1x45xf32, #tpu.memory_space<vmem>>, %arg5: memref<45x128xf32, #tpu.memory_space<vmem>>, %arg6: memref<1x128xf32, #tpu.memory_space<vmem>>, %arg7: memref<8x128xf32, #tpu.memory_space<vmem>>) attributes {dimension_semantics = [], scalar_prefetch = 0 : i64, scratch_operands = 0 : i64, tpu.core_type = #tpu.core_type<tc>} {
    %c0 = arith.constant 0 : index
    %c0_0 = arith.constant 0 : index
    %0 = vector.load %arg0[%c0, %c0_0] : memref<8x12xf32, #tpu.memory_space<vmem>>, vector<8x12xf32>
    %c0_1 = arith.constant 0 : index
    %c0_2 = arith.constant 0 : index
    %1 = vector.load %arg1[%c0_1, %c0_2] : memref<12x45xf32, #tpu.memory_space<vmem>>, vector<12x45xf32>
    %cst = arith.constant dense<0.000000e+00> : vector<8x45xf32>
    %2 = tpu.matmul %0, %1, %cst {dimension_numbers = #tpu.dot_dimension_numbers<[1], [0], [0], [1], [0, 0, 1, 1], [], []>} : vector<8x12xf32>, vector<12x45xf32>, vector<8x45xf32> -> vector<8x45xf32>
    %c0_3 = arith.constant 0 : index
    %c0_4 = arith.constant 0 : index
    %c0_5 = arith.constant 0 : index
    %3 = vector.load %arg3[%c0_3, %c0_4, %c0_5] : memref<11x1x45xf32, #tpu.memory_space<vmem>>, vector<1x1x45xf32>
    %4 = vector.shape_cast %3 : vector<1x1x45xf32> to vector<1x45xf32>
    %c0_6 = arith.constant 0 : index
    %c0_7 = arith.constant 0 : index
    %c0_8 = arith.constant 0 : index
    %5 = vector.load %arg4[%c0_6, %c0_7, %c0_8] : memref<11x1x45xf32, #tpu.memory_space<vmem>>, vector<1x1x45xf32>
    %6 = vector.shape_cast %5 : vector<1x1x45xf32> to vector<1x45xf32>
    %cst_9 = arith.constant dense<0.000000e+00> : vector<45xf32>
    %7 = vector.multi_reduction <add>, %2, %cst_9 [0] : vector<8x45xf32> to vector<45xf32>
    %8 = vector.shape_cast %7 : vector<45xf32> to vector<1x45xf32>
    %9 = arith.mulf %2, %2 : vector<8x45xf32>
    %cst_10 = arith.constant dense<0.000000e+00> : vector<45xf32>
    %10 = vector.multi_reduction <add>, %9, %cst_10 [0] : vector<8x45xf32> to vector<45xf32>
    %11 = vector.shape_cast %10 : vector<45xf32> to vector<1x45xf32>
    %cst_11 = arith.constant 1.250000e-01 : f32
    %12 = vector.broadcast %cst_11 : f32 to vector<1x45xf32>
    %13 = arith.mulf %8, %12 : vector<1x45xf32>
    %cst_12 = arith.constant 1.250000e-01 : f32
    %14 = vector.broadcast %cst_12 : f32 to vector<1x45xf32>
    %15 = arith.mulf %11, %14 : vector<1x45xf32>
    %16 = arith.mulf %13, %13 : vector<1x45xf32>
    %17 = arith.subf %15, %16 : vector<1x45xf32>
    %cst_13 = arith.constant 9.99999974E-6 : f32
    %18 = vector.broadcast %cst_13 : f32 to vector<1x45xf32>
    %19 = arith.addf %17, %18 : vector<1x45xf32>
    %20 = math.rsqrt %19 : vector<1x45xf32>
    %21 = arith.mulf %4, %20 : vector<1x45xf32>
    %22 = arith.mulf %13, %21 : vector<1x45xf32>
    %23 = arith.subf %6, %22 : vector<1x45xf32>
    %24 = vector.broadcast %21 : vector<1x45xf32> to vector<8x45xf32>
    %25 = arith.mulf %2, %24 : vector<8x45xf32>
    %26 = vector.broadcast %23 : vector<1x45xf32> to vector<8x45xf32>
    %27 = arith.addf %25, %26 : vector<8x45xf32>
    %cst_14 = arith.constant 0.000000e+00 : f32
    %28 = vector.broadcast %cst_14 : f32 to vector<8x45xf32>
    %29 = arith.maximumf %27, %28 : vector<8x45xf32>
    %c0_15 = arith.constant 0 : index
    %c0_16 = arith.constant 0 : index
    %c0_17 = arith.constant 0 : index
    %30 = vector.load %arg2[%c0_15, %c0_16, %c0_17] : memref<10x45x45xf32, #tpu.memory_space<vmem>>, vector<1x45x45xf32>
    %31 = vector.shape_cast %30 : vector<1x45x45xf32> to vector<45x45xf32>
    %cst_18 = arith.constant dense<0.000000e+00> : vector<8x45xf32>
    %32 = tpu.matmul %29, %31, %cst_18 {dimension_numbers = #tpu.dot_dimension_numbers<[1], [0], [0], [1], [0, 0, 1, 1], [], []>} : vector<8x45xf32>, vector<45x45xf32>, vector<8x45xf32> -> vector<8x45xf32>
    %c1 = arith.constant 1 : index
    %c0_19 = arith.constant 0 : index
    %c0_20 = arith.constant 0 : index
    %33 = vector.load %arg3[%c1, %c0_19, %c0_20] : memref<11x1x45xf32, #tpu.memory_space<vmem>>, vector<1x1x45xf32>
    %34 = vector.shape_cast %33 : vector<1x1x45xf32> to vector<1x45xf32>
    %c1_21 = arith.constant 1 : index
    %c0_22 = arith.constant 0 : index
    %c0_23 = arith.constant 0 : index
    %35 = vector.load %arg4[%c1_21, %c0_22, %c0_23] : memref<11x1x45xf32, #tpu.memory_space<vmem>>, vector<1x1x45xf32>
    %36 = vector.shape_cast %35 : vector<1x1x45xf32> to vector<1x45xf32>
    %cst_24 = arith.constant dense<0.000000e+00> : vector<45xf32>
    %37 = vector.multi_reduction <add>, %32, %cst_24 [0] : vector<8x45xf32> to vector<45xf32>
    %38 = vector.shape_cast %37 : vector<45xf32> to vector<1x45xf32>
    %39 = arith.mulf %32, %32 : vector<8x45xf32>
    %cst_25 = arith.constant dense<0.000000e+00> : vector<45xf32>
    %40 = vector.multi_reduction <add>, %39, %cst_25 [0] : vector<8x45xf32> to vector<45xf32>
    %41 = vector.shape_cast %40 : vector<45xf32> to vector<1x45xf32>
    %cst_26 = arith.constant 1.250000e-01 : f32
    %42 = vector.broadcast %cst_26 : f32 to vector<1x45xf32>
    %43 = arith.mulf %38, %42 : vector<1x45xf32>
    %cst_27 = arith.constant 1.250000e-01 : f32
    %44 = vector.broadcast %cst_27 : f32 to vector<1x45xf32>
    %45 = arith.mulf %41, %44 : vector<1x45xf32>
    %46 = arith.mulf %43, %43 : vector<1x45xf32>
    %47 = arith.subf %45, %46 : vector<1x45xf32>
    %cst_28 = arith.constant 9.99999974E-6 : f32
    %48 = vector.broadcast %cst_28 : f32 to vector<1x45xf32>
    %49 = arith.addf %47, %48 : vector<1x45xf32>
    %50 = math.rsqrt %49 : vector<1x45xf32>
    %51 = arith.mulf %34, %50 : vector<1x45xf32>
    %52 = arith.mulf %43, %51 : vector<1x45xf32>
    %53 = arith.subf %36, %52 : vector<1x45xf32>
    %54 = vector.broadcast %51 : vector<1x45xf32> to vector<8x45xf32>
    %55 = arith.mulf %32, %54 : vector<8x45xf32>
    %56 = vector.broadcast %53 : vector<1x45xf32> to vector<8x45xf32>
    %57 = arith.addf %55, %56 : vector<8x45xf32>
    %cst_29 = arith.constant 0.000000e+00 : f32
    %58 = vector.broadcast %cst_29 : f32 to vector<8x45xf32>
    %59 = arith.maximumf %57, %58 : vector<8x45xf32>
    %c1_30 = arith.constant 1 : index
    %c0_31 = arith.constant 0 : index
    %c0_32 = arith.constant 0 : index
    %60 = vector.load %arg2[%c1_30, %c0_31, %c0_32] : memref<10x45x45xf32, #tpu.memory_space<vmem>>, vector<1x45x45xf32>
    %61 = vector.shape_cast %60 : vector<1x45x45xf32> to vector<45x45xf32>
    %cst_33 = arith.constant dense<0.000000e+00> : vector<8x45xf32>
    %62 = tpu.matmul %59, %61, %cst_33 {dimension_numbers = #tpu.dot_dimension_numbers<[1], [0], [0], [1], [0, 0, 1, 1], [], []>} : vector<8x45xf32>, vector<45x45xf32>, vector<8x45xf32> -> vector<8x45xf32>
    %c2 = arith.constant 2 : index
    %c0_34 = arith.constant 0 : index
    %c0_35 = arith.constant 0 : index
    %63 = vector.load %arg3[%c2, %c0_34, %c0_35] : memref<11x1x45xf32, #tpu.memory_space<vmem>>, vector<1x1x45xf32>
    %64 = vector.shape_cast %63 : vector<1x1x45xf32> to vector<1x45xf32>
    %c2_36 = arith.constant 2 : index
    %c0_37 = arith.constant 0 : index
    %c0_38 = arith.constant 0 : index
    %65 = vector.load %arg4[%c2_36, %c0_37, %c0_38] : memref<11x1x45xf32, #tpu.memory_space<vmem>>, vector<1x1x45xf32>
    %66 = vector.shape_cast %65 : vector<1x1x45xf32> to vector<1x45xf32>
    %cst_39 = arith.constant dense<0.000000e+00> : vector<45xf32>
    %67 = vector.multi_reduction <add>, %62, %cst_39 [0] : vector<8x45xf32> to vector<45xf32>
    %68 = vector.shape_cast %67 : vector<45xf32> to vector<1x45xf32>
    %69 = arith.mulf %62, %62 : vector<8x45xf32>
    %cst_40 = arith.constant dense<0.000000e+00> : vector<45xf32>
    %70 = vector.multi_reduction <add>, %69, %cst_40 [0] : vector<8x45xf32> to vector<45xf32>
    %71 = vector.shape_cast %70 : vector<45xf32> to vector<1x45xf32>
    %cst_41 = arith.constant 1.250000e-01 : f32
    %72 = vector.broadcast %cst_41 : f32 to vector<1x45xf32>
    %73 = arith.mulf %68, %72 : vector<1x45xf32>
    %cst_42 = arith.constant 1.250000e-01 : f32
    %74 = vector.broadcast %cst_42 : f32 to vector<1x45xf32>
    %75 = arith.mulf %71, %74 : vector<1x45xf32>
    %76 = arith.mulf %73, %73 : vector<1x45xf32>
    %77 = arith.subf %75, %76 : vector<1x45xf32>
    %cst_43 = arith.constant 9.99999974E-6 : f32
    %78 = vector.broadcast %cst_43 : f32 to vector<1x45xf32>
    %79 = arith.addf %77, %78 : vector<1x45xf32>
    %80 = math.rsqrt %79 : vector<1x45xf32>
    %81 = arith.mulf %64, %80 : vector<1x45xf32>
    %82 = arith.mulf %73, %81 : vector<1x45xf32>
    %83 = arith.subf %66, %82 : vector<1x45xf32>
    %84 = vector.broadcast %81 : vector<1x45xf32> to vector<8x45xf32>
    %85 = arith.mulf %62, %84 : vector<8x45xf32>
    %86 = vector.broadcast %83 : vector<1x45xf32> to vector<8x45xf32>
    %87 = arith.addf %85, %86 : vector<8x45xf32>
    %cst_44 = arith.constant 0.000000e+00 : f32
    %88 = vector.broadcast %cst_44 : f32 to vector<8x45xf32>
    %89 = arith.maximumf %87, %88 : vector<8x45xf32>
    %c2_45 = arith.constant 2 : index
    %c0_46 = arith.constant 0 : index
    %c0_47 = arith.constant 0 : index
    %90 = vector.load %arg2[%c2_45, %c0_46, %c0_47] : memref<10x45x45xf32, #tpu.memory_space<vmem>>, vector<1x45x45xf32>
    %91 = vector.shape_cast %90 : vector<1x45x45xf32> to vector<45x45xf32>
    %cst_48 = arith.constant dense<0.000000e+00> : vector<8x45xf32>
    %92 = tpu.matmul %89, %91, %cst_48 {dimension_numbers = #tpu.dot_dimension_numbers<[1], [0], [0], [1], [0, 0, 1, 1], [], []>} : vector<8x45xf32>, vector<45x45xf32>, vector<8x45xf32> -> vector<8x45xf32>
    %c3 = arith.constant 3 : index
    %c0_49 = arith.constant 0 : index
    %c0_50 = arith.constant 0 : index
    %93 = vector.load %arg3[%c3, %c0_49, %c0_50] : memref<11x1x45xf32, #tpu.memory_space<vmem>>, vector<1x1x45xf32>
    %94 = vector.shape_cast %93 : vector<1x1x45xf32> to vector<1x45xf32>
    %c3_51 = arith.constant 3 : index
    %c0_52 = arith.constant 0 : index
    %c0_53 = arith.constant 0 : index
    %95 = vector.load %arg4[%c3_51, %c0_52, %c0_53] : memref<11x1x45xf32, #tpu.memory_space<vmem>>, vector<1x1x45xf32>
    %96 = vector.shape_cast %95 : vector<1x1x45xf32> to vector<1x45xf32>
    %cst_54 = arith.constant dense<0.000000e+00> : vector<45xf32>
    %97 = vector.multi_reduction <add>, %92, %cst_54 [0] : vector<8x45xf32> to vector<45xf32>
    %98 = vector.shape_cast %97 : vector<45xf32> to vector<1x45xf32>
    %99 = arith.mulf %92, %92 : vector<8x45xf32>
    %cst_55 = arith.constant dense<0.000000e+00> : vector<45xf32>
    %100 = vector.multi_reduction <add>, %99, %cst_55 [0] : vector<8x45xf32> to vector<45xf32>
    %101 = vector.shape_cast %100 : vector<45xf32> to vector<1x45xf32>
    %cst_56 = arith.constant 1.250000e-01 : f32
    %102 = vector.broadcast %cst_56 : f32 to vector<1x45xf32>
    %103 = arith.mulf %98, %102 : vector<1x45xf32>
    %cst_57 = arith.constant 1.250000e-01 : f32
    %104 = vector.broadcast %cst_57 : f32 to vector<1x45xf32>
    %105 = arith.mulf %101, %104 : vector<1x45xf32>
    %106 = arith.mulf %103, %103 : vector<1x45xf32>
    %107 = arith.subf %105, %106 : vector<1x45xf32>
    %cst_58 = arith.constant 9.99999974E-6 : f32
    %108 = vector.broadcast %cst_58 : f32 to vector<1x45xf32>
    %109 = arith.addf %107, %108 : vector<1x45xf32>
    %110 = math.rsqrt %109 : vector<1x45xf32>
    %111 = arith.mulf %94, %110 : vector<1x45xf32>
    %112 = arith.mulf %103, %111 : vector<1x45xf32>
    %113 = arith.subf %96, %112 : vector<1x45xf32>
    %114 = vector.broadcast %111 : vector<1x45xf32> to vector<8x45xf32>
    %115 = arith.mulf %92, %114 : vector<8x45xf32>
    %116 = vector.broadcast %113 : vector<1x45xf32> to vector<8x45xf32>
    %117 = arith.addf %115, %116 : vector<8x45xf32>
    %cst_59 = arith.constant 0.000000e+00 : f32
    %118 = vector.broadcast %cst_59 : f32 to vector<8x45xf32>
    %119 = arith.maximumf %117, %118 : vector<8x45xf32>
    %c3_60 = arith.constant 3 : index
    %c0_61 = arith.constant 0 : index
    %c0_62 = arith.constant 0 : index
    %120 = vector.load %arg2[%c3_60, %c0_61, %c0_62] : memref<10x45x45xf32, #tpu.memory_space<vmem>>, vector<1x45x45xf32>
    %121 = vector.shape_cast %120 : vector<1x45x45xf32> to vector<45x45xf32>
    %cst_63 = arith.constant dense<0.000000e+00> : vector<8x45xf32>
    %122 = tpu.matmul %119, %121, %cst_63 {dimension_numbers = #tpu.dot_dimension_numbers<[1], [0], [0], [1], [0, 0, 1, 1], [], []>} : vector<8x45xf32>, vector<45x45xf32>, vector<8x45xf32> -> vector<8x45xf32>
    %c4 = arith.constant 4 : index
    %c0_64 = arith.constant 0 : index
    %c0_65 = arith.constant 0 : index
    %123 = vector.load %arg3[%c4, %c0_64, %c0_65] : memref<11x1x45xf32, #tpu.memory_space<vmem>>, vector<1x1x45xf32>
    %124 = vector.shape_cast %123 : vector<1x1x45xf32> to vector<1x45xf32>
    %c4_66 = arith.constant 4 : index
    %c0_67 = arith.constant 0 : index
    %c0_68 = arith.constant 0 : index
    %125 = vector.load %arg4[%c4_66, %c0_67, %c0_68] : memref<11x1x45xf32, #tpu.memory_space<vmem>>, vector<1x1x45xf32>
    %126 = vector.shape_cast %125 : vector<1x1x45xf32> to vector<1x45xf32>
    %cst_69 = arith.constant dense<0.000000e+00> : vector<45xf32>
    %127 = vector.multi_reduction <add>, %122, %cst_69 [0] : vector<8x45xf32> to vector<45xf32>
    %128 = vector.shape_cast %127 : vector<45xf32> to vector<1x45xf32>
    %129 = arith.mulf %122, %122 : vector<8x45xf32>
    %cst_70 = arith.constant dense<0.000000e+00> : vector<45xf32>
    %130 = vector.multi_reduction <add>, %129, %cst_70 [0] : vector<8x45xf32> to vector<45xf32>
    %131 = vector.shape_cast %130 : vector<45xf32> to vector<1x45xf32>
    %cst_71 = arith.constant 1.250000e-01 : f32
    %132 = vector.broadcast %cst_71 : f32 to vector<1x45xf32>
    %133 = arith.mulf %128, %132 : vector<1x45xf32>
    %cst_72 = arith.constant 1.250000e-01 : f32
    %134 = vector.broadcast %cst_72 : f32 to vector<1x45xf32>
    %135 = arith.mulf %131, %134 : vector<1x45xf32>
    %136 = arith.mulf %133, %133 : vector<1x45xf32>
    %137 = arith.subf %135, %136 : vector<1x45xf32>
    %cst_73 = arith.constant 9.99999974E-6 : f32
    %138 = vector.broadcast %cst_73 : f32 to vector<1x45xf32>
    %139 = arith.addf %137, %138 : vector<1x45xf32>
    %140 = math.rsqrt %139 : vector<1x45xf32>
    %141 = arith.mulf %124, %140 : vector<1x45xf32>
    %142 = arith.mulf %133, %141 : vector<1x45xf32>
    %143 = arith.subf %126, %142 : vector<1x45xf32>
    %144 = vector.broadcast %141 : vector<1x45xf32> to vector<8x45xf32>
    %145 = arith.mulf %122, %144 : vector<8x45xf32>
    %146 = vector.broadcast %143 : vector<1x45xf32> to vector<8x45xf32>
    %147 = arith.addf %145, %146 : vector<8x45xf32>
    %cst_74 = arith.constant 0.000000e+00 : f32
    %148 = vector.broadcast %cst_74 : f32 to vector<8x45xf32>
    %149 = arith.maximumf %147, %148 : vector<8x45xf32>
    %c4_75 = arith.constant 4 : index
    %c0_76 = arith.constant 0 : index
    %c0_77 = arith.constant 0 : index
    %150 = vector.load %arg2[%c4_75, %c0_76, %c0_77] : memref<10x45x45xf32, #tpu.memory_space<vmem>>, vector<1x45x45xf32>
    %151 = vector.shape_cast %150 : vector<1x45x45xf32> to vector<45x45xf32>
    %cst_78 = arith.constant dense<0.000000e+00> : vector<8x45xf32>
    %152 = tpu.matmul %149, %151, %cst_78 {dimension_numbers = #tpu.dot_dimension_numbers<[1], [0], [0], [1], [0, 0, 1, 1], [], []>} : vector<8x45xf32>, vector<45x45xf32>, vector<8x45xf32> -> vector<8x45xf32>
    %c5 = arith.constant 5 : index
    %c0_79 = arith.constant 0 : index
    %c0_80 = arith.constant 0 : index
    %153 = vector.load %arg3[%c5, %c0_79, %c0_80] : memref<11x1x45xf32, #tpu.memory_space<vmem>>, vector<1x1x45xf32>
    %154 = vector.shape_cast %153 : vector<1x1x45xf32> to vector<1x45xf32>
    %c5_81 = arith.constant 5 : index
    %c0_82 = arith.constant 0 : index
    %c0_83 = arith.constant 0 : index
    %155 = vector.load %arg4[%c5_81, %c0_82, %c0_83] : memref<11x1x45xf32, #tpu.memory_space<vmem>>, vector<1x1x45xf32>
    %156 = vector.shape_cast %155 : vector<1x1x45xf32> to vector<1x45xf32>
    %cst_84 = arith.constant dense<0.000000e+00> : vector<45xf32>
    %157 = vector.multi_reduction <add>, %152, %cst_84 [0] : vector<8x45xf32> to vector<45xf32>
    %158 = vector.shape_cast %157 : vector<45xf32> to vector<1x45xf32>
    %159 = arith.mulf %152, %152 : vector<8x45xf32>
    %cst_85 = arith.constant dense<0.000000e+00> : vector<45xf32>
    %160 = vector.multi_reduction <add>, %159, %cst_85 [0] : vector<8x45xf32> to vector<45xf32>
    %161 = vector.shape_cast %160 : vector<45xf32> to vector<1x45xf32>
    %cst_86 = arith.constant 1.250000e-01 : f32
    %162 = vector.broadcast %cst_86 : f32 to vector<1x45xf32>
    %163 = arith.mulf %158, %162 : vector<1x45xf32>
    %cst_87 = arith.constant 1.250000e-01 : f32
    %164 = vector.broadcast %cst_87 : f32 to vector<1x45xf32>
    %165 = arith.mulf %161, %164 : vector<1x45xf32>
    %166 = arith.mulf %163, %163 : vector<1x45xf32>
    %167 = arith.subf %165, %166 : vector<1x45xf32>
    %cst_88 = arith.constant 9.99999974E-6 : f32
    %168 = vector.broadcast %cst_88 : f32 to vector<1x45xf32>
    %169 = arith.addf %167, %168 : vector<1x45xf32>
    %170 = math.rsqrt %169 : vector<1x45xf32>
    %171 = arith.mulf %154, %170 : vector<1x45xf32>
    %172 = arith.mulf %163, %171 : vector<1x45xf32>
    %173 = arith.subf %156, %172 : vector<1x45xf32>
    %174 = vector.broadcast %171 : vector<1x45xf32> to vector<8x45xf32>
    %175 = arith.mulf %152, %174 : vector<8x45xf32>
    %176 = vector.broadcast %173 : vector<1x45xf32> to vector<8x45xf32>
    %177 = arith.addf %175, %176 : vector<8x45xf32>
    %cst_89 = arith.constant 0.000000e+00 : f32
    %178 = vector.broadcast %cst_89 : f32 to vector<8x45xf32>
    %179 = arith.maximumf %177, %178 : vector<8x45xf32>
    %c5_90 = arith.constant 5 : index
    %c0_91 = arith.constant 0 : index
    %c0_92 = arith.constant 0 : index
    %180 = vector.load %arg2[%c5_90, %c0_91, %c0_92] : memref<10x45x45xf32, #tpu.memory_space<vmem>>, vector<1x45x45xf32>
    %181 = vector.shape_cast %180 : vector<1x45x45xf32> to vector<45x45xf32>
    %cst_93 = arith.constant dense<0.000000e+00> : vector<8x45xf32>
    %182 = tpu.matmul %179, %181, %cst_93 {dimension_numbers = #tpu.dot_dimension_numbers<[1], [0], [0], [1], [0, 0, 1, 1], [], []>} : vector<8x45xf32>, vector<45x45xf32>, vector<8x45xf32> -> vector<8x45xf32>
    %c6 = arith.constant 6 : index
    %c0_94 = arith.constant 0 : index
    %c0_95 = arith.constant 0 : index
    %183 = vector.load %arg3[%c6, %c0_94, %c0_95] : memref<11x1x45xf32, #tpu.memory_space<vmem>>, vector<1x1x45xf32>
    %184 = vector.shape_cast %183 : vector<1x1x45xf32> to vector<1x45xf32>
    %c6_96 = arith.constant 6 : index
    %c0_97 = arith.constant 0 : index
    %c0_98 = arith.constant 0 : index
    %185 = vector.load %arg4[%c6_96, %c0_97, %c0_98] : memref<11x1x45xf32, #tpu.memory_space<vmem>>, vector<1x1x45xf32>
    %186 = vector.shape_cast %185 : vector<1x1x45xf32> to vector<1x45xf32>
    %cst_99 = arith.constant dense<0.000000e+00> : vector<45xf32>
    %187 = vector.multi_reduction <add>, %182, %cst_99 [0] : vector<8x45xf32> to vector<45xf32>
    %188 = vector.shape_cast %187 : vector<45xf32> to vector<1x45xf32>
    %189 = arith.mulf %182, %182 : vector<8x45xf32>
    %cst_100 = arith.constant dense<0.000000e+00> : vector<45xf32>
    %190 = vector.multi_reduction <add>, %189, %cst_100 [0] : vector<8x45xf32> to vector<45xf32>
    %191 = vector.shape_cast %190 : vector<45xf32> to vector<1x45xf32>
    %cst_101 = arith.constant 1.250000e-01 : f32
    %192 = vector.broadcast %cst_101 : f32 to vector<1x45xf32>
    %193 = arith.mulf %188, %192 : vector<1x45xf32>
    %cst_102 = arith.constant 1.250000e-01 : f32
    %194 = vector.broadcast %cst_102 : f32 to vector<1x45xf32>
    %195 = arith.mulf %191, %194 : vector<1x45xf32>
    %196 = arith.mulf %193, %193 : vector<1x45xf32>
    %197 = arith.subf %195, %196 : vector<1x45xf32>
    %cst_103 = arith.constant 9.99999974E-6 : f32
    %198 = vector.broadcast %cst_103 : f32 to vector<1x45xf32>
    %199 = arith.addf %197, %198 : vector<1x45xf32>
    %200 = math.rsqrt %199 : vector<1x45xf32>
    %201 = arith.mulf %184, %200 : vector<1x45xf32>
    %202 = arith.mulf %193, %201 : vector<1x45xf32>
    %203 = arith.subf %186, %202 : vector<1x45xf32>
    %204 = vector.broadcast %201 : vector<1x45xf32> to vector<8x45xf32>
    %205 = arith.mulf %182, %204 : vector<8x45xf32>
    %206 = vector.broadcast %203 : vector<1x45xf32> to vector<8x45xf32>
    %207 = arith.addf %205, %206 : vector<8x45xf32>
    %cst_104 = arith.constant 0.000000e+00 : f32
    %208 = vector.broadcast %cst_104 : f32 to vector<8x45xf32>
    %209 = arith.maximumf %207, %208 : vector<8x45xf32>
    %c6_105 = arith.constant 6 : index
    %c0_106 = arith.constant 0 : index
    %c0_107 = arith.constant 0 : index
    %210 = vector.load %arg2[%c6_105, %c0_106, %c0_107] : memref<10x45x45xf32, #tpu.memory_space<vmem>>, vector<1x45x45xf32>
    %211 = vector.shape_cast %210 : vector<1x45x45xf32> to vector<45x45xf32>
    %cst_108 = arith.constant dense<0.000000e+00> : vector<8x45xf32>
    %212 = tpu.matmul %209, %211, %cst_108 {dimension_numbers = #tpu.dot_dimension_numbers<[1], [0], [0], [1], [0, 0, 1, 1], [], []>} : vector<8x45xf32>, vector<45x45xf32>, vector<8x45xf32> -> vector<8x45xf32>
    %c7 = arith.constant 7 : index
    %c0_109 = arith.constant 0 : index
    %c0_110 = arith.constant 0 : index
    %213 = vector.load %arg3[%c7, %c0_109, %c0_110] : memref<11x1x45xf32, #tpu.memory_space<vmem>>, vector<1x1x45xf32>
    %214 = vector.shape_cast %213 : vector<1x1x45xf32> to vector<1x45xf32>
    %c7_111 = arith.constant 7 : index
    %c0_112 = arith.constant 0 : index
    %c0_113 = arith.constant 0 : index
    %215 = vector.load %arg4[%c7_111, %c0_112, %c0_113] : memref<11x1x45xf32, #tpu.memory_space<vmem>>, vector<1x1x45xf32>
    %216 = vector.shape_cast %215 : vector<1x1x45xf32> to vector<1x45xf32>
    %cst_114 = arith.constant dense<0.000000e+00> : vector<45xf32>
    %217 = vector.multi_reduction <add>, %212, %cst_114 [0] : vector<8x45xf32> to vector<45xf32>
    %218 = vector.shape_cast %217 : vector<45xf32> to vector<1x45xf32>
    %219 = arith.mulf %212, %212 : vector<8x45xf32>
    %cst_115 = arith.constant dense<0.000000e+00> : vector<45xf32>
    %220 = vector.multi_reduction <add>, %219, %cst_115 [0] : vector<8x45xf32> to vector<45xf32>
    %221 = vector.shape_cast %220 : vector<45xf32> to vector<1x45xf32>
    %cst_116 = arith.constant 1.250000e-01 : f32
    %222 = vector.broadcast %cst_116 : f32 to vector<1x45xf32>
    %223 = arith.mulf %218, %222 : vector<1x45xf32>
    %cst_117 = arith.constant 1.250000e-01 : f32
    %224 = vector.broadcast %cst_117 : f32 to vector<1x45xf32>
    %225 = arith.mulf %221, %224 : vector<1x45xf32>
    %226 = arith.mulf %223, %223 : vector<1x45xf32>
    %227 = arith.subf %225, %226 : vector<1x45xf32>
    %cst_118 = arith.constant 9.99999974E-6 : f32
    %228 = vector.broadcast %cst_118 : f32 to vector<1x45xf32>
    %229 = arith.addf %227, %228 : vector<1x45xf32>
    %230 = math.rsqrt %229 : vector<1x45xf32>
    %231 = arith.mulf %214, %230 : vector<1x45xf32>
    %232 = arith.mulf %223, %231 : vector<1x45xf32>
    %233 = arith.subf %216, %232 : vector<1x45xf32>
    %234 = vector.broadcast %231 : vector<1x45xf32> to vector<8x45xf32>
    %235 = arith.mulf %212, %234 : vector<8x45xf32>
    %236 = vector.broadcast %233 : vector<1x45xf32> to vector<8x45xf32>
    %237 = arith.addf %235, %236 : vector<8x45xf32>
    %cst_119 = arith.constant 0.000000e+00 : f32
    %238 = vector.broadcast %cst_119 : f32 to vector<8x45xf32>
    %239 = arith.maximumf %237, %238 : vector<8x45xf32>
    %c7_120 = arith.constant 7 : index
    %c0_121 = arith.constant 0 : index
    %c0_122 = arith.constant 0 : index
    %240 = vector.load %arg2[%c7_120, %c0_121, %c0_122] : memref<10x45x45xf32, #tpu.memory_space<vmem>>, vector<1x45x45xf32>
    %241 = vector.shape_cast %240 : vector<1x45x45xf32> to vector<45x45xf32>
    %cst_123 = arith.constant dense<0.000000e+00> : vector<8x45xf32>
    %242 = tpu.matmul %239, %241, %cst_123 {dimension_numbers = #tpu.dot_dimension_numbers<[1], [0], [0], [1], [0, 0, 1, 1], [], []>} : vector<8x45xf32>, vector<45x45xf32>, vector<8x45xf32> -> vector<8x45xf32>
    %c8 = arith.constant 8 : index
    %c0_124 = arith.constant 0 : index
    %c0_125 = arith.constant 0 : index
    %243 = vector.load %arg3[%c8, %c0_124, %c0_125] : memref<11x1x45xf32, #tpu.memory_space<vmem>>, vector<1x1x45xf32>
    %244 = vector.shape_cast %243 : vector<1x1x45xf32> to vector<1x45xf32>
    %c8_126 = arith.constant 8 : index
    %c0_127 = arith.constant 0 : index
    %c0_128 = arith.constant 0 : index
    %245 = vector.load %arg4[%c8_126, %c0_127, %c0_128] : memref<11x1x45xf32, #tpu.memory_space<vmem>>, vector<1x1x45xf32>
    %246 = vector.shape_cast %245 : vector<1x1x45xf32> to vector<1x45xf32>
    %cst_129 = arith.constant dense<0.000000e+00> : vector<45xf32>
    %247 = vector.multi_reduction <add>, %242, %cst_129 [0] : vector<8x45xf32> to vector<45xf32>
    %248 = vector.shape_cast %247 : vector<45xf32> to vector<1x45xf32>
    %249 = arith.mulf %242, %242 : vector<8x45xf32>
    %cst_130 = arith.constant dense<0.000000e+00> : vector<45xf32>
    %250 = vector.multi_reduction <add>, %249, %cst_130 [0] : vector<8x45xf32> to vector<45xf32>
    %251 = vector.shape_cast %250 : vector<45xf32> to vector<1x45xf32>
    %cst_131 = arith.constant 1.250000e-01 : f32
    %252 = vector.broadcast %cst_131 : f32 to vector<1x45xf32>
    %253 = arith.mulf %248, %252 : vector<1x45xf32>
    %cst_132 = arith.constant 1.250000e-01 : f32
    %254 = vector.broadcast %cst_132 : f32 to vector<1x45xf32>
    %255 = arith.mulf %251, %254 : vector<1x45xf32>
    %256 = arith.mulf %253, %253 : vector<1x45xf32>
    %257 = arith.subf %255, %256 : vector<1x45xf32>
    %cst_133 = arith.constant 9.99999974E-6 : f32
    %258 = vector.broadcast %cst_133 : f32 to vector<1x45xf32>
    %259 = arith.addf %257, %258 : vector<1x45xf32>
    %260 = math.rsqrt %259 : vector<1x45xf32>
    %261 = arith.mulf %244, %260 : vector<1x45xf32>
    %262 = arith.mulf %253, %261 : vector<1x45xf32>
    %263 = arith.subf %246, %262 : vector<1x45xf32>
    %264 = vector.broadcast %261 : vector<1x45xf32> to vector<8x45xf32>
    %265 = arith.mulf %242, %264 : vector<8x45xf32>
    %266 = vector.broadcast %263 : vector<1x45xf32> to vector<8x45xf32>
    %267 = arith.addf %265, %266 : vector<8x45xf32>
    %cst_134 = arith.constant 0.000000e+00 : f32
    %268 = vector.broadcast %cst_134 : f32 to vector<8x45xf32>
    %269 = arith.maximumf %267, %268 : vector<8x45xf32>
    %c8_135 = arith.constant 8 : index
    %c0_136 = arith.constant 0 : index
    %c0_137 = arith.constant 0 : index
    %270 = vector.load %arg2[%c8_135, %c0_136, %c0_137] : memref<10x45x45xf32, #tpu.memory_space<vmem>>, vector<1x45x45xf32>
    %271 = vector.shape_cast %270 : vector<1x45x45xf32> to vector<45x45xf32>
    %cst_138 = arith.constant dense<0.000000e+00> : vector<8x45xf32>
    %272 = tpu.matmul %269, %271, %cst_138 {dimension_numbers = #tpu.dot_dimension_numbers<[1], [0], [0], [1], [0, 0, 1, 1], [], []>} : vector<8x45xf32>, vector<45x45xf32>, vector<8x45xf32> -> vector<8x45xf32>
    %c9 = arith.constant 9 : index
    %c0_139 = arith.constant 0 : index
    %c0_140 = arith.constant 0 : index
    %273 = vector.load %arg3[%c9, %c0_139, %c0_140] : memref<11x1x45xf32, #tpu.memory_space<vmem>>, vector<1x1x45xf32>
    %274 = vector.shape_cast %273 : vector<1x1x45xf32> to vector<1x45xf32>
    %c9_141 = arith.constant 9 : index
    %c0_142 = arith.constant 0 : index
    %c0_143 = arith.constant 0 : index
    %275 = vector.load %arg4[%c9_141, %c0_142, %c0_143] : memref<11x1x45xf32, #tpu.memory_space<vmem>>, vector<1x1x45xf32>
    %276 = vector.shape_cast %275 : vector<1x1x45xf32> to vector<1x45xf32>
    %cst_144 = arith.constant dense<0.000000e+00> : vector<45xf32>
    %277 = vector.multi_reduction <add>, %272, %cst_144 [0] : vector<8x45xf32> to vector<45xf32>
    %278 = vector.shape_cast %277 : vector<45xf32> to vector<1x45xf32>
    %279 = arith.mulf %272, %272 : vector<8x45xf32>
    %cst_145 = arith.constant dense<0.000000e+00> : vector<45xf32>
    %280 = vector.multi_reduction <add>, %279, %cst_145 [0] : vector<8x45xf32> to vector<45xf32>
    %281 = vector.shape_cast %280 : vector<45xf32> to vector<1x45xf32>
    %cst_146 = arith.constant 1.250000e-01 : f32
    %282 = vector.broadcast %cst_146 : f32 to vector<1x45xf32>
    %283 = arith.mulf %278, %282 : vector<1x45xf32>
    %cst_147 = arith.constant 1.250000e-01 : f32
    %284 = vector.broadcast %cst_147 : f32 to vector<1x45xf32>
    %285 = arith.mulf %281, %284 : vector<1x45xf32>
    %286 = arith.mulf %283, %283 : vector<1x45xf32>
    %287 = arith.subf %285, %286 : vector<1x45xf32>
    %cst_148 = arith.constant 9.99999974E-6 : f32
    %288 = vector.broadcast %cst_148 : f32 to vector<1x45xf32>
    %289 = arith.addf %287, %288 : vector<1x45xf32>
    %290 = math.rsqrt %289 : vector<1x45xf32>
    %291 = arith.mulf %274, %290 : vector<1x45xf32>
    %292 = arith.mulf %283, %291 : vector<1x45xf32>
    %293 = arith.subf %276, %292 : vector<1x45xf32>
    %294 = vector.broadcast %291 : vector<1x45xf32> to vector<8x45xf32>
    %295 = arith.mulf %272, %294 : vector<8x45xf32>
    %296 = vector.broadcast %293 : vector<1x45xf32> to vector<8x45xf32>
    %297 = arith.addf %295, %296 : vector<8x45xf32>
    %cst_149 = arith.constant 0.000000e+00 : f32
    %298 = vector.broadcast %cst_149 : f32 to vector<8x45xf32>
    %299 = arith.maximumf %297, %298 : vector<8x45xf32>
    %c9_150 = arith.constant 9 : index
    %c0_151 = arith.constant 0 : index
    %c0_152 = arith.constant 0 : index
    %300 = vector.load %arg2[%c9_150, %c0_151, %c0_152] : memref<10x45x45xf32, #tpu.memory_space<vmem>>, vector<1x45x45xf32>
    %301 = vector.shape_cast %300 : vector<1x45x45xf32> to vector<45x45xf32>
    %cst_153 = arith.constant dense<0.000000e+00> : vector<8x45xf32>
    %302 = tpu.matmul %299, %301, %cst_153 {dimension_numbers = #tpu.dot_dimension_numbers<[1], [0], [0], [1], [0, 0, 1, 1], [], []>} : vector<8x45xf32>, vector<45x45xf32>, vector<8x45xf32> -> vector<8x45xf32>
    %c10 = arith.constant 10 : index
    %c0_154 = arith.constant 0 : index
    %c0_155 = arith.constant 0 : index
    %303 = vector.load %arg3[%c10, %c0_154, %c0_155] : memref<11x1x45xf32, #tpu.memory_space<vmem>>, vector<1x1x45xf32>
    %304 = vector.shape_cast %303 : vector<1x1x45xf32> to vector<1x45xf32>
    %c10_156 = arith.constant 10 : index
    %c0_157 = arith.constant 0 : index
    %c0_158 = arith.constant 0 : index
    %305 = vector.load %arg4[%c10_156, %c0_157, %c0_158] : memref<11x1x45xf32, #tpu.memory_space<vmem>>, vector<1x1x45xf32>
    %306 = vector.shape_cast %305 : vector<1x1x45xf32> to vector<1x45xf32>
    %cst_159 = arith.constant dense<0.000000e+00> : vector<45xf32>
    %307 = vector.multi_reduction <add>, %302, %cst_159 [0] : vector<8x45xf32> to vector<45xf32>
    %308 = vector.shape_cast %307 : vector<45xf32> to vector<1x45xf32>
    %309 = arith.mulf %302, %302 : vector<8x45xf32>
    %cst_160 = arith.constant dense<0.000000e+00> : vector<45xf32>
    %310 = vector.multi_reduction <add>, %309, %cst_160 [0] : vector<8x45xf32> to vector<45xf32>
    %311 = vector.shape_cast %310 : vector<45xf32> to vector<1x45xf32>
    %cst_161 = arith.constant 1.250000e-01 : f32
    %312 = vector.broadcast %cst_161 : f32 to vector<1x45xf32>
    %313 = arith.mulf %308, %312 : vector<1x45xf32>
    %cst_162 = arith.constant 1.250000e-01 : f32
    %314 = vector.broadcast %cst_162 : f32 to vector<1x45xf32>
    %315 = arith.mulf %311, %314 : vector<1x45xf32>
    %316 = arith.mulf %313, %313 : vector<1x45xf32>
    %317 = arith.subf %315, %316 : vector<1x45xf32>
    %cst_163 = arith.constant 9.99999974E-6 : f32
    %318 = vector.broadcast %cst_163 : f32 to vector<1x45xf32>
    %319 = arith.addf %317, %318 : vector<1x45xf32>
    %320 = math.rsqrt %319 : vector<1x45xf32>
    %321 = arith.mulf %304, %320 : vector<1x45xf32>
    %322 = arith.mulf %313, %321 : vector<1x45xf32>
    %323 = arith.subf %306, %322 : vector<1x45xf32>
    %324 = vector.broadcast %321 : vector<1x45xf32> to vector<8x45xf32>
    %325 = arith.mulf %302, %324 : vector<8x45xf32>
    %326 = vector.broadcast %323 : vector<1x45xf32> to vector<8x45xf32>
    %327 = arith.addf %325, %326 : vector<8x45xf32>
    %cst_164 = arith.constant 0.000000e+00 : f32
    %328 = vector.broadcast %cst_164 : f32 to vector<8x45xf32>
    %329 = arith.maximumf %327, %328 : vector<8x45xf32>
    %c0_165 = arith.constant 0 : index
    %c0_166 = arith.constant 0 : index
    %330 = vector.load %arg5[%c0_165, %c0_166] : memref<45x128xf32, #tpu.memory_space<vmem>>, vector<45x128xf32>
    %cst_167 = arith.constant dense<0.000000e+00> : vector<8x128xf32>
    %331 = tpu.matmul %329, %330, %cst_167 {dimension_numbers = #tpu.dot_dimension_numbers<[1], [0], [0], [1], [0, 0, 1, 1], [], []>} : vector<8x45xf32>, vector<45x128xf32>, vector<8x128xf32> -> vector<8x128xf32>
    %c0_168 = arith.constant 0 : index
    %c0_169 = arith.constant 0 : index
    %332 = vector.load %arg6[%c0_168, %c0_169] : memref<1x128xf32, #tpu.memory_space<vmem>>, vector<1x128xf32>
    %333 = vector.broadcast %332 : vector<1x128xf32> to vector<8x128xf32>
    %334 = arith.addf %331, %333 : vector<8x128xf32>
    %c0_170 = arith.constant 0 : index
    %c0_171 = arith.constant 0 : index
    %335 = vector.load %arg7[%c0_170, %c0_171] : memref<8x128xf32, #tpu.memory_space<vmem>>, vector<8x128xf32>
    tpu.vector_store %arg7[%c0_170, %c0_171], %334 {strides = array<i32>} : memref<8x128xf32, #tpu.memory_space<vmem>>, vector<8x128xf32>,
    return
  }
}

</mosaic_0001>

<bundles_post_ra>
// kernel: quadrotor_pinn_forward.1
= control target key start
LH: loop header
LB: loop body
LE: loop exit
PB: predicated region body
PF: predicated region fallthrough
CT: control target
= control target key end

     0   :  { %12 = vsyncpa [#allocation3], 0  ;;  %s1864_s24 = smov [#allocation2]   ;;  %s2171_s0 = inlined_call_operand.vmem [shape: f32[8,12], index: 0, kind: input, shape index: {}]   ;;  %s2172_s1 = inlined_call_operand.vmem [shape: f32[12,45], index: 1, kind: input, shape index: {}]   ;;  %s2173_s2 = inlined_call_operand.hbm [shape: f32[10,45,45], index: 2, kind: input, shape index: {}]   ;;  %s2174_s3 = inlined_call_operand.vmem [shape: f32[11,1,45], index: 3, kind: input, shape index: {}]   ;;  %s2175_s4 = inlined_call_operand.vmem [shape: f32[11,1,45], index: 4, kind: input, shape index: {}]   ;;  %s2176_s5 = inlined_call_operand.vmem [shape: f32[45,128], index: 5, kind: input, shape index: {}]   ;;  %s2177_s6 = inlined_call_operand.vmem [shape: f32[1,128], index: 6, kind: input, shape index: {}]   ;;  %s2178_s7 = inlined_call_operand.vmem [shape: f32[8,128], index: 7, kind: output, shape index: {}]  }
   0x1   :  { %s22_s25 = sshll.u32 %s1864_s24, 4  ;;  %s23_s25 = int_to_ptr.vmem [resolvable:$true] %s22_s25 }
   0x2   :  { %s1850_s26 = scalar_lea.vmem %s23_s25, 7680  ;;  %p1855_p1 = scmp.lt.s32.totalorder %s23_s25, %s23_s25 }
   0x3   :  { %p1851_p0 = scmp.ne.s32.totalorder %s23_s25, %s1850_s26  ;;  %p1856_p2 = scmp.lt.s32.totalorder %s1850_s26, %s1850_s26 }
   0x5   :  { %p1857_p3 = por %p1856_p2, %p1855_p1 }
   0x7   :  { %p1858_p4 = pnand %p1857_p3, %p1851_p0 }
   0x9   :  { %1861 = shalt.err (!%p1858_p4)
}
   0xa   :  { %s1865_s27 = smov 128   ;;  %s1866_s28 = smov 8  }
   0xb   :  { %28 = dma.hbm_to_vmem [thread:$0]  %s2173_s2, 7680, %s23_s25, [#allocation3], %s1865_s27, %s1865_s27, %s1866_s28  }
   0xc   :  { %1862 = dma.done.wait [#allocation3], 7680  }
   0xd   :  { %1863 = vsyncadd [#allocation3], 4294959616  ;;  %v1867_v0 = vmov 0.0   ;;  %vm1868_vm0 = vmmov 0   ;;  %vm47_vm1 = vcmask 1043456   ;;  %v41_v2 = vld [vmem:[%s2172_s1] sm:$0xff]  ;;  %v149_v32 = vlaneseq }
   0xe   :  { %1643 = vmatprep.subr.mxu0 %v1867_v0  ;;  %1647 = vmatprep.mubr.msk.f32.mxu0 %vm1868_vm0, %v1867_v0  ;;  %v42_v1 = vld [vmem:[%s2172_s1 + $0x8] sm:$0xf]  ;;  %v40_v3 = vld [vmem:[%s2171_s0] sm:$0xff]  ;;  %vm43_vm2 = vcmask 97280   ;;  %vm172_vm3 = vcmask 1044480   ;;  %v166_v6 = vld [vmem:[#allocation2 + $0x18] sm:$0xff] }
   0xf   :  { %1650 = vmatprep.subr.mxu1 %v1867_v0  ;;  %1662 = vmatprep.mubr.msk.f32.mxu1 %vm1868_vm0, %v1867_v0  ;;  %v168_v4 = vld [vmem:[#allocation2 + $0x28] sm:$0x1f]  ;;  %v167_v5 = vld [vmem:[#allocation2 + $0x20] sm:$0xff]  ;;  %v165_v7 = vld [vmem:[#allocation2 + $0x10] sm:$0xff]  ;;  %vm123_vm4 = vcmask 367616   ;;  %v150_v33 = vshrl.u32 %v149_v32, 7 }
  0x10   :  { %1644 = vmatpush3.msk.msra.mxu0 %vm47_vm1, %v42_v1  ;;  %1651 = vmatpush3.msk.msra.mxu1 %vm172_vm3, %v168_v4  ;;  %v164_v8 = vld [vmem:[#allocation2 + $0x8] sm:$0xff]  ;;  %v163_v9 = vld [vmem:[#allocation2] sm:$0xff]  ;;  %v295_v46 = vld [vmem:[#allocation2 + $0x58] sm:$0x1f] }
  0x11   :  { %1645 = vmatprep.subr.mxu0 %v1867_v0  ;;  %1652 = vmatprep.subr.mxu1 %v1867_v0  ;;  %v121_v34 = vld [vmem:[%s2174_s3] sm:$0x1]  ;;  %v1943_v35 = vsub.s32 0, %v150_v33  ;;  %v294_v47 = vld [vmem:[#allocation2 + $0x50] sm:$0xff]  ;;  %v293_v48 = vld [vmem:[#allocation2 + $0x48] sm:$0xff] }
  0x12   :  { %1646 = vmatpush3.msra.mxu0 %v41_v2  ;;  %1653 = vmatpush3.msra.mxu1 %v167_v5  ;;  %v122_v38 = vld [vmem:[%s2175_s4] sm:$0x1]  ;;  %v291_v50 = vld [vmem:[#allocation2 + $0x38] sm:$0xff]  ;;  %v290_v51 = vld [vmem:[#allocation2 + $0x30] sm:$0xff] }
  0x13   :  { %1648 = vmatmul.mubr.msk.f32.vlgmr.msra.gmra.mxu0 %vm43_vm2, %v40_v3  ;;  %1665 = vmatprep.subr.mxu0 %v1867_v0  ;;  %v292_v49 = vld [vmem:[#allocation2 + $0x40] sm:$0xff] }
  0x14   :  { %1677 = vmatprep.mubr.msk.f32.mxu0 %vm1868_vm0, %v1867_v0  ;;  %1654 = vmatprep.subr.mxu1 %v1867_v0 }
  0x15   :  { %1655 = vmatpush3.msra.mxu1 %v166_v6  ;;  %1666 = vmatpush3.msk.msra.mxu0 %vm172_vm3, %v295_v46 }
  0x16   :  { %1656 = vmatprep.subr.mxu1 %v1867_v0  ;;  %1667 = vmatprep.subr.mxu0 %v1867_v0 }
  0x17   :  { %1657 = vmatpush3.msra.mxu1 %v165_v7  ;;  %1668 = vmatpush3.msra.mxu0 %v294_v47 }
  0x18   :  { %1658 = vmatprep.subr.mxu1 %v1867_v0  ;;  %1669 = vmatprep.subr.mxu0 %v1867_v0 }
  0x19   :  { %1659 = vmatpush3.msra.mxu1 %v164_v8  ;;  %1670 = vmatpush3.msra.mxu0 %v293_v48 }
  0x1a   :  { %1660 = vmatprep.subr.mxu1 %v1867_v0  ;;  %1671 = vmatprep.subr.mxu0 %v1867_v0 }
  0x1b   :  { %1661 = vmatpush3.msra.mxu1 %v163_v9  ;;  %1672 = vmatpush3.msra.mxu0 %v292_v49 }
  0x1c   :  { %1680 = vmatprep.subr.mxu1 %v1867_v0  ;;  %1673 = vmatprep.subr.mxu0 %v1867_v0 }
  0x1d   :  { %1674 = vmatpush3.msra.mxu0 %v291_v50 }
  0x1e   :  { %1675 = vmatprep.subr.mxu0 %v1867_v0 }
  0x1f   :  { %1676 = vmatpush3.msra.mxu0 %v290_v51  ;;  %v1526_v51 = vld [vmem:[%s2174_s3 + $0x2] sm:$0x1] }
  0x20   :  { %1695 = vmatprep.subr.mxu0 %v1867_v0 }
  0xd3   :  { %v117_v10 = vpop.f32.mrf.mxu0 }
  0xd4   :  { %v124_v11 = vsel %vm123_vm4, %v117_v10, 0.0  ;;  %v131_v12 = vmul.f32 %v117_v10, %v117_v10 }
  0xd5   :  { %v125_v13 = vrot.slane %v124_v11, 4  ;;  %v1649_v14 = vpop.f32.mrf.mxu0 }
  0xd6   :  { %v132_v15 = vsel %vm123_vm4, %v131_v12, 0.0  ;;  %v1523_v14 = vld [vmem:[%s2175_s4 + $0x1] sm:$0x1] }
  0xd7   :  { %v126_v16 = vadd.f32 %v125_v13, %v124_v11  ;;  %v133_v17 = vrot.slane %v132_v15, 4  ;;  %v1522_v11 = vld [vmem:[%s2174_s3 + $0x1] sm:$0x1] }
  0xd9   :  { %v127_v18 = vrot.slane %v126_v16, 2  ;;  %v134_v19 = vadd.f32 %v133_v17, %v132_v15 }
  0xdb   :  { %v128_v20 = vadd.f32 %v127_v18, %v126_v16  ;;  %v135_v21 = vrot.slane %v134_v19, 2 }
  0xdd   :  { %v129_v22 = vrot.slane %v128_v20, 1  ;;  %v136_v23 = vadd.f32 %v135_v21, %v134_v19 }
  0xdf   :  { %v130_v24 = vadd.f32 %v129_v22, %v128_v20  ;;  %v137_v25 = vrot.slane %v136_v23, 1  ;;  %v421_v22 = vld [vmem:[#allocation2 + $0x88] sm:$0x1f] }
  0xe1   :  { %v138_v26 = vadd.f32 %v137_v25, %v136_v23  ;;  %v139_v27 = vmul.f32 0.125, %v130_v24  ;;  %v420_v23 = vld [vmem:[#allocation2 + $0x80] sm:$0xff]  ;;  %v419_v24 = vld [vmem:[#allocation2 + $0x78] sm:$0xff]  ;;  %v418_v25 = vld [vmem:[#allocation2 + $0x70] sm:$0xff] }
  0xe3   :  { %v140_v28 = vmul.f32 0.125, %v138_v26  ;;  %v141_v29 = vmul.f32 %v139_v27, %v139_v27  ;;  %v417_v26 = vld [vmem:[#allocation2 + $0x68] sm:$0xff] }
  0xe5   :  { %v142_v30 = vsub.f32 %v140_v28, %v141_v29 }
  0xe7   :  { %v143_v31 = vadd.f32 1e-05, %v142_v30 }
  0xe9   :  { %1820 = vrsqrt.f32 %v143_v31 }
  0xf6   :  { %v1821_v36 = vpop.eup %1820 }
  0xf7   :  { %v145_v37 = vmul.f32 %v1821_v36, %v121_v34 }
  0xf9   :  { %v146_v39 = vmul.f32 %v145_v37, %v139_v27  ;;  %v152_v40 = vrot.slane %v145_v37, %v1943_v35  ;;  %v416_v27 = vld [vmem:[#allocation2 + $0x60] sm:$0xff] }
  0xfb   :  { %v147_v41 = vsub.f32 %v122_v38, %v146_v39  ;;  %v154_v42 = vmul.f32 %v152_v40, %v117_v10 }
  0xfd   :  { %v159_v43 = vrot.slane %v147_v41, %v1943_v35 }
  0xff   :  { %v161_v44 = vadd.f32 %v159_v43, %v154_v42 }
 0x101   :  { %v162_v45 = vmax.f32 %v161_v44, 0.0 }
 0x103   :  { %1663 = vmatmul.mubr.msk.f32.vlgmr.msra.gmra.mxu1 %vm123_vm4, %v162_v45 }
 0x104   :  { %1692 = vmatprep.mubr.msk.f32.mxu1 %vm1868_vm0, %v1867_v0  ;;  %1681 = vmatpush3.msk.msra.mxu1 %vm172_vm3, %v421_v22 }
 0x105   :  { %1682 = vmatprep.subr.mxu1 %v1867_v0 }
 0x106   :  { %1683 = vmatpush3.msra.mxu1 %v420_v23 }
 0x107   :  { %1684 = vmatprep.subr.mxu1 %v1867_v0 }
 0x108   :  { %1685 = vmatpush3.msra.mxu1 %v419_v24 }
 0x109   :  { %1686 = vmatprep.subr.mxu1 %v1867_v0 }
 0x10a   :  { %1687 = vmatpush3.msra.mxu1 %v418_v25 }
 0x10b   :  { %1688 = vmatprep.subr.mxu1 %v1867_v0 }
 0x10c   :  { %1689 = vmatpush3.msra.mxu1 %v417_v26 }
 0x10d   :  { %1690 = vmatprep.subr.mxu1 %v1867_v0 }
 0x10e   :  { %1691 = vmatpush3.msra.mxu1 %v416_v27  ;;  %v1530_v27 = vld [vmem:[%s2174_s3 + $0x3] sm:$0x1] }
 0x10f   :  { %1710 = vmatprep.subr.mxu1 %v1867_v0 }
 0x1c3   :  { %v242_v52 = vpop.f32.mrf.mxu1 }
 0x1c4   :  { %v250_v53 = vsel %vm123_vm4, %v242_v52, 0.0  ;;  %v257_v54 = vmul.f32 %v242_v52, %v242_v52 }
 0x1c5   :  { %v251_v55 = vrot.slane %v250_v53, 4  ;;  %v1664_v56 = vpop.f32.mrf.mxu1 }
 0x1c6   :  { %v258_v57 = vsel %vm123_vm4, %v257_v54, 0.0  ;;  %v1527_v54 = vld [vmem:[%s2175_s4 + $0x2] sm:$0x1] }
 0x1c7   :  { %v252_v58 = vadd.f32 %v251_v55, %v250_v53  ;;  %v259_v59 = vrot.slane %v258_v57, 4 }
 0x1c9   :  { %v253_v60 = vrot.slane %v252_v58, 2  ;;  %v260_v61 = vadd.f32 %v259_v59, %v258_v57 }
 0x1cb   :  { %v254_v62 = vadd.f32 %v253_v60, %v252_v58  ;;  %v261_v63 = vrot.slane %v260_v61, 2 }
 0x1cd   :  { %v255_v1 = vrot.slane %v254_v62, 1  ;;  %v262_v2 = vadd.f32 %v261_v63, %v260_v61  ;;  %v546_v63 = vld [vmem:[#allocation2 + $0xb0] sm:$0xff] }
 0x1cf   :  { %v256_v3 = vadd.f32 %v255_v1, %v254_v62  ;;  %v263_v4 = vrot.slane %v262_v2, 1  ;;  %v547_v62 = vld [vmem:[#allocation2 + $0xb8] sm:$0x1f]  ;;  %v545_v1 = vld [vmem:[#allocation2 + $0xa8] sm:$0xff] }
 0x1d1   :  { %v264_v5 = vadd.f32 %v263_v4, %v262_v2  ;;  %v265_v6 = vmul.f32 0.125, %v256_v3  ;;  %v544_v2 = vld [vmem:[#allocation2 + $0xa0] sm:$0xff]  ;;  %v543_v3 = vld [vmem:[#allocation2 + $0x98] sm:$0xff]  ;;  %v542_v4 = vld [vmem:[#allocation2 + $0x90] sm:$0xff] }
 0x1d3   :  { %v266_v7 = vmul.f32 0.125, %v264_v5  ;;  %v267_v8 = vmul.f32 %v265_v6, %v265_v6 }
 0x1d5   :  { %v268_v9 = vsub.f32 %v266_v7, %v267_v8 }
 0x1d7   :  { %v269_v10 = vadd.f32 1e-05, %v268_v9 }
 0x1d9   :  { %1822 = vrsqrt.f32 %v269_v10 }
 0x1e6   :  { %v1823_v12 = vpop.eup %1822 }
 0x1e7   :  { %v271_v13 = vmul.f32 %v1823_v12, %v1522_v11 }
 0x1e9   :  { %v272_v15 = vmul.f32 %v271_v13, %v265_v6  ;;  %v278_v16 = vrot.slane %v271_v13, %v1943_v35 }
 0x1eb   :  { %v273_v17 = vsub.f32 %v1523_v14, %v272_v15  ;;  %v280_v18 = vmul.f32 %v278_v16, %v242_v52 }
 0x1ed   :  { %v285_v19 = vrot.slane %v273_v17, %v1943_v35 }
 0x1ef   :  { %v287_v20 = vadd.f32 %v285_v19, %v280_v18 }
 0x1f1   :  { %v288_v21 = vmax.f32 %v287_v20, 0.0 }
 0x1f3   :  { %1678 = vmatmul.mubr.msk.f32.vlgmr.msra.gmra.mxu0 %vm123_vm4, %v288_v21 }
 0x1f4   :  { %1707 = vmatprep.mubr.msk.f32.mxu0 %vm1868_vm0, %v1867_v0  ;;  %1696 = vmatpush3.msk.msra.mxu0 %vm172_vm3, %v547_v62 }
 0x1f5   :  { %1697 = vmatprep.subr.mxu0 %v1867_v0 }
 0x1f6   :  { %1698 = vmatpush3.msra.mxu0 %v546_v63 }
 0x1f7   :  { %1699 = vmatprep.subr.mxu0 %v1867_v0 }
 0x1f8   :  { %1700 = vmatpush3.msra.mxu0 %v545_v1 }
 0x1f9   :  { %1701 = vmatprep.subr.mxu0 %v1867_v0 }
 0x1fa   :  { %1702 = vmatpush3.msra.mxu0 %v544_v2 }
 0x1fb   :  { %1703 = vmatprep.subr.mxu0 %v1867_v0 }
 0x1fc   :  { %1704 = vmatpush3.msra.mxu0 %v543_v3 }
 0x1fd   :  { %1705 = vmatprep.subr.mxu0 %v1867_v0 }
 0x1fe   :  { %1706 = vmatpush3.msra.mxu0 %v542_v4  ;;  %v1534_v4 = vld [vmem:[%s2174_s3 + $0x4] sm:$0x1] }
 0x1ff   :  { %1725 = vmatprep.subr.mxu0 %v1867_v0 }
 0x2b3   :  { %v368_v28 = vpop.f32.mrf.mxu0 }
 0x2b4   :  { %v376_v29 = vsel %vm123_vm4, %v368_v28, 0.0  ;;  %v383_v30 = vmul.f32 %v368_v28, %v368_v28 }
 0x2b5   :  { %v377_v31 = vrot.slane %v376_v29, 4  ;;  %v1679_v32 = vpop.f32.mrf.mxu0 }
 0x2b6   :  { %v384_v33 = vsel %vm123_vm4, %v383_v30, 0.0  ;;  %v1531_v30 = vld [vmem:[%s2175_s4 + $0x3] sm:$0x1] }
 0x2b7   :  { %v378_v34 = vadd.f32 %v377_v31, %v376_v29  ;;  %v385_v36 = vrot.slane %v384_v33, 4 }
 0x2b9   :  { %v379_v37 = vrot.slane %v378_v34, 2  ;;  %v386_v38 = vadd.f32 %v385_v36, %v384_v33 }
 0x2bb   :  { %v380_v39 = vadd.f32 %v379_v37, %v378_v34  ;;  %v387_v40 = vrot.slane %v386_v38, 2 }
 0x2bd   :  { %v381_v41 = vrot.slane %v380_v39, 1  ;;  %v388_v42 = vadd.f32 %v387_v40, %v386_v38  ;;  %v672_v40 = vld [vmem:[#allocation2 + $0xe0] sm:$0xff] }
 0x2bf   :  { %v382_v43 = vadd.f32 %v381_v41, %v380_v39  ;;  %v389_v44 = vrot.slane %v388_v42, 1  ;;  %v673_v39 = vld [vmem:[#allocation2 + $0xe8] sm:$0x1f]  ;;  %v671_v41 = vld [vmem:[#allocation2 + $0xd8] sm:$0xff] }
 0x2c1   :  { %v390_v45 = vadd.f32 %v389_v44, %v388_v42  ;;  %v391_v46 = vmul.f32 0.125, %v382_v43  ;;  %v670_v42 = vld [vmem:[#allocation2 + $0xd0] sm:$0xff]  ;;  %v669_v43 = vld [vmem:[#allocation2 + $0xc8] sm:$0xff]  ;;  %v668_v44 = vld [vmem:[#allocation2 + $0xc0] sm:$0xff] }
 0x2c3   :  { %v392_v47 = vmul.f32 0.125, %v390_v45  ;;  %v393_v48 = vmul.f32 %v391_v46, %v391_v46 }
 0x2c5   :  { %v394_v49 = vsub.f32 %v392_v47, %v393_v48 }
 0x2c7   :  { %v395_v50 = vadd.f32 1e-05, %v394_v49 }
 0x2c9   :  { %1824 = vrsqrt.f32 %v395_v50 }
 0x2d6   :  { %v1825_v52 = vpop.eup %1824 }
 0x2d7   :  { %v397_v53 = vmul.f32 %v1825_v52, %v1526_v51 }
 0x2d9   :  { %v398_v55 = vmul.f32 %v397_v53, %v391_v46  ;;  %v404_v56 = vrot.slane %v397_v53, %v1943_v35 }
 0x2db   :  { %v399_v57 = vsub.f32 %v1527_v54, %v398_v55  ;;  %v406_v58 = vmul.f32 %v404_v56, %v368_v28 }
 0x2dd   :  { %v411_v59 = vrot.slane %v399_v57, %v1943_v35 }
 0x2df   :  { %v413_v60 = vadd.f32 %v411_v59, %v406_v58 }
 0x2e1   :  { %v414_v61 = vmax.f32 %v413_v60, 0.0 }
 0x2e3   :  { %1693 = vmatmul.mubr.msk.f32.vlgmr.msra.gmra.mxu1 %vm123_vm4, %v414_v61 }
 0x2e4   :  { %1722 = vmatprep.mubr.msk.f32.mxu1 %vm1868_vm0, %v1867_v0  ;;  %1711 = vmatpush3.msk.msra.mxu1 %vm172_vm3, %v673_v39 }
 0x2e5   :  { %1712 = vmatprep.subr.mxu1 %v1867_v0 }
 0x2e6   :  { %1713 = vmatpush3.msra.mxu1 %v672_v40 }
 0x2e7   :  { %1714 = vmatprep.subr.mxu1 %v1867_v0 }
 0x2e8   :  { %1715 = vmatpush3.msra.mxu1 %v671_v41 }
 0x2e9   :  { %1716 = vmatprep.subr.mxu1 %v1867_v0 }
 0x2ea   :  { %1717 = vmatpush3.msra.mxu1 %v670_v42 }
 0x2eb   :  { %1718 = vmatprep.subr.mxu1 %v1867_v0 }
 0x2ec   :  { %1719 = vmatpush3.msra.mxu1 %v669_v43 }
 0x2ed   :  { %1720 = vmatprep.subr.mxu1 %v1867_v0 }
 0x2ee   :  { %1721 = vmatpush3.msra.mxu1 %v668_v44  ;;  %v1538_v44 = vld [vmem:[%s2174_s3 + $0x5] sm:$0x1] }
 0x2ef   :  { %1740 = vmatprep.subr.mxu1 %v1867_v0 }
 0x3a3   :  { %v494_v5 = vpop.f32.mrf.mxu1 }
 0x3a4   :  { %v502_v6 = vsel %vm123_vm4, %v494_v5, 0.0  ;;  %v509_v7 = vmul.f32 %v494_v5, %v494_v5 }
 0x3a5   :  { %v503_v8 = vrot.slane %v502_v6, 4  ;;  %v1694_v9 = vpop.f32.mrf.mxu1 }
 0x3a6   :  { %v510_v10 = vsel %vm123_vm4, %v509_v7, 0.0  ;;  %v1535_v7 = vld [vmem:[%s2175_s4 + $0x4] sm:$0x1] }
 0x3a7   :  { %v504_v11 = vadd.f32 %v503_v8, %v502_v6  ;;  %v511_v12 = vrot.slane %v510_v10, 4 }
 0x3a9   :  { %v505_v13 = vrot.slane %v504_v11, 2  ;;  %v512_v14 = vadd.f32 %v511_v12, %v510_v10 }
 0x3ab   :  { %v506_v15 = vadd.f32 %v505_v13, %v504_v11  ;;  %v513_v16 = vrot.slane %v512_v14, 2 }
 0x3ad   :  { %v507_v17 = vrot.slane %v506_v15, 1  ;;  %v514_v18 = vadd.f32 %v513_v16, %v512_v14  ;;  %v798_v16 = vld [vmem:[#allocation2 + $0x110] sm:$0xff] }
 0x3af   :  { %v508_v19 = vadd.f32 %v507_v17, %v506_v15  ;;  %v515_v20 = vrot.slane %v514_v18, 1  ;;  %v799_v15 = vld [vmem:[#allocation2 + $0x118] sm:$0x1f]  ;;  %v797_v17 = vld [vmem:[#allocation2 + $0x108] sm:$0xff] }
 0x3b1   :  { %v516_v21 = vadd.f32 %v515_v20, %v514_v18  ;;  %v517_v22 = vmul.f32 0.125, %v508_v19  ;;  %v796_v18 = vld [vmem:[#allocation2 + $0x100] sm:$0xff]  ;;  %v795_v19 = vld [vmem:[#allocation2 + $0xf8] sm:$0xff]  ;;  %v794_v20 = vld [vmem:[#allocation2 + $0xf0] sm:$0xff] }
 0x3b3   :  { %v518_v23 = vmul.f32 0.125, %v516_v21  ;;  %v519_v24 = vmul.f32 %v517_v22, %v517_v22 }
 0x3b5   :  { %v520_v25 = vsub.f32 %v518_v23, %v519_v24 }
 0x3b7   :  { %v521_v26 = vadd.f32 1e-05, %v520_v25 }
 0x3b9   :  { %1826 = vrsqrt.f32 %v521_v26 }
 0x3c6   :  { %v1827_v28 = vpop.eup %1826 }
 0x3c7   :  { %v523_v29 = vmul.f32 %v1827_v28, %v1530_v27 }
 0x3c9   :  { %v524_v31 = vmul.f32 %v523_v29, %v517_v22  ;;  %v530_v32 = vrot.slane %v523_v29, %v1943_v35 }
 0x3cb   :  { %v525_v33 = vsub.f32 %v1531_v30, %v524_v31  ;;  %v532_v34 = vmul.f32 %v530_v32, %v494_v5 }
 0x3cd   :  { %v537_v36 = vrot.slane %v525_v33, %v1943_v35 }
 0x3cf   :  { %v539_v37 = vadd.f32 %v537_v36, %v532_v34 }
 0x3d1   :  { %v540_v38 = vmax.f32 %v539_v37, 0.0 }
 0x3d3   :  { %1708 = vmatmul.mubr.msk.f32.vlgmr.msra.gmra.mxu0 %vm123_vm4, %v540_v38 }
 0x3d4   :  { %1737 = vmatprep.mubr.msk.f32.mxu0 %vm1868_vm0, %v1867_v0  ;;  %1726 = vmatpush3.msk.msra.mxu0 %vm172_vm3, %v799_v15 }
 0x3d5   :  { %1727 = vmatprep.subr.mxu0 %v1867_v0 }
 0x3d6   :  { %1728 = vmatpush3.msra.mxu0 %v798_v16 }
 0x3d7   :  { %1729 = vmatprep.subr.mxu0 %v1867_v0 }
 0x3d8   :  { %1730 = vmatpush3.msra.mxu0 %v797_v17 }
 0x3d9   :  { %1731 = vmatprep.subr.mxu0 %v1867_v0 }
 0x3da   :  { %1732 = vmatpush3.msra.mxu0 %v796_v18 }
 0x3db   :  { %1733 = vmatprep.subr.mxu0 %v1867_v0 }
 0x3dc   :  { %1734 = vmatpush3.msra.mxu0 %v795_v19 }
 0x3dd   :  { %1735 = vmatprep.subr.mxu0 %v1867_v0 }
 0x3de   :  { %1736 = vmatpush3.msra.mxu0 %v794_v20  ;;  %v1542_v20 = vld [vmem:[%s2174_s3 + $0x6] sm:$0x1] }
 0x3df   :  { %1755 = vmatprep.subr.mxu0 %v1867_v0 }
 0x493   :  { %v620_v45 = vpop.f32.mrf.mxu0 }
 0x494   :  { %v628_v46 = vsel %vm123_vm4, %v620_v45, 0.0  ;;  %v635_v47 = vmul.f32 %v620_v45, %v620_v45 }
 0x495   :  { %v629_v48 = vrot.slane %v628_v46, 4  ;;  %v1709_v49 = vpop.f32.mrf.mxu0 }
 0x496   :  { %v636_v50 = vsel %vm123_vm4, %v635_v47, 0.0  ;;  %v1539_v47 = vld [vmem:[%s2175_s4 + $0x5] sm:$0x1] }
 0x497   :  { %v630_v51 = vadd.f32 %v629_v48, %v628_v46  ;;  %v637_v52 = vrot.slane %v636_v50, 4 }
 0x499   :  { %v631_v53 = vrot.slane %v630_v51, 2  ;;  %v638_v54 = vadd.f32 %v637_v52, %v636_v50 }
 0x49b   :  { %v632_v55 = vadd.f32 %v631_v53, %v630_v51  ;;  %v639_v56 = vrot.slane %v638_v54, 2 }
 0x49d   :  { %v633_v57 = vrot.slane %v632_v55, 1  ;;  %v640_v58 = vadd.f32 %v639_v56, %v638_v54  ;;  %v924_v56 = vld [vmem:[#allocation2 + $0x140] sm:$0xff] }
 0x49f   :  { %v634_v59 = vadd.f32 %v633_v57, %v632_v55  ;;  %v641_v60 = vrot.slane %v640_v58, 1  ;;  %v925_v55 = vld [vmem:[#allocation2 + $0x148] sm:$0x1f]  ;;  %v923_v57 = vld [vmem:[#allocation2 + $0x138] sm:$0xff] }
 0x4a1   :  { %v642_v61 = vadd.f32 %v641_v60, %v640_v58  ;;  %v643_v62 = vmul.f32 0.125, %v634_v59  ;;  %v922_v58 = vld [vmem:[#allocation2 + $0x130] sm:$0xff]  ;;  %v921_v59 = vld [vmem:[#allocation2 + $0x128] sm:$0xff]  ;;  %v920_v60 = vld [vmem:[#allocation2 + $0x120] sm:$0xff] }
 0x4a3   :  { %v644_v63 = vmul.f32 0.125, %v642_v61  ;;  %v645_v1 = vmul.f32 %v643_v62, %v643_v62 }
 0x4a5   :  { %v646_v2 = vsub.f32 %v644_v63, %v645_v1 }
 0x4a7   :  { %v647_v3 = vadd.f32 1e-05, %v646_v2 }
 0x4a9   :  { %1828 = vrsqrt.f32 %v647_v3 }
 0x4b6   :  { %v1829_v5 = vpop.eup %1828 }
 0x4b7   :  { %v649_v6 = vmul.f32 %v1829_v5, %v1534_v4 }
 0x4b9   :  { %v650_v8 = vmul.f32 %v649_v6, %v643_v62  ;;  %v656_v9 = vrot.slane %v649_v6, %v1943_v35 }
 0x4bb   :  { %v651_v10 = vsub.f32 %v1535_v7, %v650_v8  ;;  %v658_v11 = vmul.f32 %v656_v9, %v620_v45 }
 0x4bd   :  { %v663_v12 = vrot.slane %v651_v10, %v1943_v35 }
 0x4bf   :  { %v665_v13 = vadd.f32 %v663_v12, %v658_v11 }
 0x4c1   :  { %v666_v14 = vmax.f32 %v665_v13, 0.0 }
 0x4c3   :  { %1723 = vmatmul.mubr.msk.f32.vlgmr.msra.gmra.mxu1 %vm123_vm4, %v666_v14 }
 0x4c4   :  { %1752 = vmatprep.mubr.msk.f32.mxu1 %vm1868_vm0, %v1867_v0  ;;  %1741 = vmatpush3.msk.msra.mxu1 %vm172_vm3, %v925_v55 }
 0x4c5   :  { %1742 = vmatprep.subr.mxu1 %v1867_v0 }
 0x4c6   :  { %1743 = vmatpush3.msra.mxu1 %v924_v56 }
 0x4c7   :  { %1744 = vmatprep.subr.mxu1 %v1867_v0 }
 0x4c8   :  { %1745 = vmatpush3.msra.mxu1 %v923_v57 }
 0x4c9   :  { %1746 = vmatprep.subr.mxu1 %v1867_v0 }
 0x4ca   :  { %1747 = vmatpush3.msra.mxu1 %v922_v58 }
 0x4cb   :  { %1748 = vmatprep.subr.mxu1 %v1867_v0 }
 0x4cc   :  { %1749 = vmatpush3.msra.mxu1 %v921_v59 }
 0x4cd   :  { %1750 = vmatprep.subr.mxu1 %v1867_v0 }
 0x4ce   :  { %1751 = vmatpush3.msra.mxu1 %v920_v60  ;;  %v1546_v60 = vld [vmem:[%s2174_s3 + $0x7] sm:$0x1] }
 0x4cf   :  { %1770 = vmatprep.subr.mxu1 %v1867_v0 }
 0x583   :  { %v746_v21 = vpop.f32.mrf.mxu1 }
 0x584   :  { %v754_v22 = vsel %vm123_vm4, %v746_v21, 0.0  ;;  %v761_v23 = vmul.f32 %v746_v21, %v746_v21 }
 0x585   :  { %v755_v24 = vrot.slane %v754_v22, 4  ;;  %v1724_v25 = vpop.f32.mrf.mxu1 }
 0x586   :  { %v762_v26 = vsel %vm123_vm4, %v761_v23, 0.0  ;;  %v1543_v23 = vld [vmem:[%s2175_s4 + $0x6] sm:$0x1] }
 0x587   :  { %v756_v27 = vadd.f32 %v755_v24, %v754_v22  ;;  %v763_v28 = vrot.slane %v762_v26, 4 }
 0x589   :  { %v757_v29 = vrot.slane %v756_v27, 2  ;;  %v764_v30 = vadd.f32 %v763_v28, %v762_v26 }
 0x58b   :  { %v758_v31 = vadd.f32 %v757_v29, %v756_v27  ;;  %v765_v32 = vrot.slane %v764_v30, 2 }
 0x58d   :  { %v759_v33 = vrot.slane %v758_v31, 1  ;;  %v766_v34 = vadd.f32 %v765_v32, %v764_v30  ;;  %v1050_v32 = vld [vmem:[#allocation2 + $0x170] sm:$0xff] }
 0x58f   :  { %v760_v36 = vadd.f32 %v759_v33, %v758_v31  ;;  %v767_v37 = vrot.slane %v766_v34, 1  ;;  %v1051_v31 = vld [vmem:[#allocation2 + $0x178] sm:$0x1f]  ;;  %v1049_v33 = vld [vmem:[#allocation2 + $0x168] sm:$0xff] }
 0x591   :  { %v768_v38 = vadd.f32 %v767_v37, %v766_v34  ;;  %v769_v39 = vmul.f32 0.125, %v760_v36  ;;  %v1048_v34 = vld [vmem:[#allocation2 + $0x160] sm:$0xff]  ;;  %v1047_v36 = vld [vmem:[#allocation2 + $0x158] sm:$0xff]  ;;  %v1046_v37 = vld [vmem:[#allocation2 + $0x150] sm:$0xff] }
 0x593   :  { %v770_v40 = vmul.f32 0.125, %v768_v38  ;;  %v771_v41 = vmul.f32 %v769_v39, %v769_v39 }
 0x595   :  { %v772_v42 = vsub.f32 %v770_v40, %v771_v41 }
 0x597   :  { %v773_v43 = vadd.f32 1e-05, %v772_v42 }
 0x599   :  { %1830 = vrsqrt.f32 %v773_v43 }
 0x5a6   :  { %v1831_v45 = vpop.eup %1830 }
 0x5a7   :  { %v775_v46 = vmul.f32 %v1831_v45, %v1538_v44 }
 0x5a9   :  { %v776_v48 = vmul.f32 %v775_v46, %v769_v39  ;;  %v782_v49 = vrot.slane %v775_v46, %v1943_v35 }
 0x5ab   :  { %v777_v50 = vsub.f32 %v1539_v47, %v776_v48  ;;  %v784_v51 = vmul.f32 %v782_v49, %v746_v21 }
 0x5ad   :  { %v789_v52 = vrot.slane %v777_v50, %v1943_v35 }
 0x5af   :  { %v791_v53 = vadd.f32 %v789_v52, %v784_v51 }
 0x5b1   :  { %v792_v54 = vmax.f32 %v791_v53, 0.0 }
 0x5b3   :  { %1738 = vmatmul.mubr.msk.f32.vlgmr.msra.gmra.mxu0 %vm123_vm4, %v792_v54 }
 0x5b4   :  { %1767 = vmatprep.mubr.msk.f32.mxu0 %vm1868_vm0, %v1867_v0  ;;  %1756 = vmatpush3.msk.msra.mxu0 %vm172_vm3, %v1051_v31 }
 0x5b5   :  { %1757 = vmatprep.subr.mxu0 %v1867_v0 }
 0x5b6   :  { %1758 = vmatpush3.msra.mxu0 %v1050_v32 }
 0x5b7   :  { %1759 = vmatprep.subr.mxu0 %v1867_v0 }
 0x5b8   :  { %1760 = vmatpush3.msra.mxu0 %v1049_v33 }
 0x5b9   :  { %1761 = vmatprep.subr.mxu0 %v1867_v0 }
 0x5ba   :  { %1762 = vmatpush3.msra.mxu0 %v1048_v34 }
 0x5bb   :  { %1763 = vmatprep.subr.mxu0 %v1867_v0 }
 0x5bc   :  { %1764 = vmatpush3.msra.mxu0 %v1047_v36 }
 0x5bd   :  { %1765 = vmatprep.subr.mxu0 %v1867_v0 }
 0x5be   :  { %1766 = vmatpush3.msra.mxu0 %v1046_v37  ;;  %v1550_v37 = vld [vmem:[%s2174_s3 + $0x8] sm:$0x1] }
 0x5bf   :  { %1785 = vmatprep.subr.mxu0 %v1867_v0 }
 0x673   :  { %v872_v61 = vpop.f32.mrf.mxu0 }
 0x674   :  { %v880_v62 = vsel %vm123_vm4, %v872_v61, 0.0  ;;  %v887_v63 = vmul.f32 %v872_v61, %v872_v61 }
 0x675   :  { %v881_v1 = vrot.slane %v880_v62, 4  ;;  %v1739_v2 = vpop.f32.mrf.mxu0 }
 0x676   :  { %v888_v3 = vsel %vm123_vm4, %v887_v63, 0.0  ;;  %v1547_v63 = vld [vmem:[%s2175_s4 + $0x7] sm:$0x1] }
 0x677   :  { %v882_v4 = vadd.f32 %v881_v1, %v880_v62  ;;  %v889_v5 = vrot.slane %v888_v3, 4 }
 0x679   :  { %v883_v6 = vrot.slane %v882_v4, 2  ;;  %v890_v7 = vadd.f32 %v889_v5, %v888_v3 }
 0x67b   :  { %v884_v8 = vadd.f32 %v883_v6, %v882_v4  ;;  %v891_v9 = vrot.slane %v890_v7, 2 }
 0x67d   :  { %v885_v10 = vrot.slane %v884_v8, 1  ;;  %v892_v11 = vadd.f32 %v891_v9, %v890_v7  ;;  %v1176_v9 = vld [vmem:[#allocation2 + $0x1a0] sm:$0xff] }
 0x67f   :  { %v886_v12 = vadd.f32 %v885_v10, %v884_v8  ;;  %v893_v13 = vrot.slane %v892_v11, 1  ;;  %v1177_v8 = vld [vmem:[#allocation2 + $0x1a8] sm:$0x1f]  ;;  %v1175_v10 = vld [vmem:[#allocation2 + $0x198] sm:$0xff] }
 0x681   :  { %v894_v14 = vadd.f32 %v893_v13, %v892_v11  ;;  %v895_v15 = vmul.f32 0.125, %v886_v12  ;;  %v1174_v11 = vld [vmem:[#allocation2 + $0x190] sm:$0xff]  ;;  %v1173_v12 = vld [vmem:[#allocation2 + $0x188] sm:$0xff]  ;;  %v1172_v13 = vld [vmem:[#allocation2 + $0x180] sm:$0xff] }
 0x683   :  { %v896_v16 = vmul.f32 0.125, %v894_v14  ;;  %v897_v17 = vmul.f32 %v895_v15, %v895_v15 }
 0x685   :  { %v898_v18 = vsub.f32 %v896_v16, %v897_v17 }
 0x687   :  { %v899_v19 = vadd.f32 1e-05, %v898_v18 }
 0x689   :  { %1832 = vrsqrt.f32 %v899_v19 }
 0x696   :  { %v1833_v21 = vpop.eup %1832 }
 0x697   :  { %v901_v22 = vmul.f32 %v1833_v21, %v1542_v20 }
 0x699   :  { %v902_v24 = vmul.f32 %v901_v22, %v895_v15  ;;  %v908_v25 = vrot.slane %v901_v22, %v1943_v35 }
 0x69b   :  { %v903_v26 = vsub.f32 %v1543_v23, %v902_v24  ;;  %v910_v27 = vmul.f32 %v908_v25, %v872_v61 }
 0x69d   :  { %v915_v28 = vrot.slane %v903_v26, %v1943_v35 }
 0x69f   :  { %v917_v29 = vadd.f32 %v915_v28, %v910_v27 }
 0x6a1   :  { %v918_v30 = vmax.f32 %v917_v29, 0.0 }
 0x6a3   :  { %1753 = vmatmul.mubr.msk.f32.vlgmr.msra.gmra.mxu1 %vm123_vm4, %v918_v30 }
 0x6a4   :  { %1782 = vmatprep.mubr.msk.f32.mxu1 %vm1868_vm0, %v1867_v0  ;;  %1771 = vmatpush3.msk.msra.mxu1 %vm172_vm3, %v1177_v8 }
 0x6a5   :  { %1772 = vmatprep.subr.mxu1 %v1867_v0 }
 0x6a6   :  { %1773 = vmatpush3.msra.mxu1 %v1176_v9 }
 0x6a7   :  { %1774 = vmatprep.subr.mxu1 %v1867_v0 }
 0x6a8   :  { %1775 = vmatpush3.msra.mxu1 %v1175_v10 }
 0x6a9   :  { %1776 = vmatprep.subr.mxu1 %v1867_v0 }
 0x6aa   :  { %1777 = vmatpush3.msra.mxu1 %v1174_v11 }
 0x6ab   :  { %1778 = vmatprep.subr.mxu1 %v1867_v0 }
 0x6ac   :  { %1779 = vmatpush3.msra.mxu1 %v1173_v12 }
 0x6ad   :  { %1780 = vmatprep.subr.mxu1 %v1867_v0 }
 0x6ae   :  { %1781 = vmatpush3.msra.mxu1 %v1172_v13  ;;  %v1554_v13 = vld [vmem:[%s2174_s3 + $0x9] sm:$0x1] }
 0x6af   :  { %1800 = vmatprep.subr.mxu1 %v1867_v0 }
 0x763   :  { %v998_v38 = vpop.f32.mrf.mxu1 }
 0x764   :  { %v1006_v39 = vsel %vm123_vm4, %v998_v38, 0.0  ;;  %v1013_v40 = vmul.f32 %v998_v38, %v998_v38 }
 0x765   :  { %v1007_v41 = vrot.slane %v1006_v39, 4  ;;  %v1754_v42 = vpop.f32.mrf.mxu1 }
 0x766   :  { %v1014_v43 = vsel %vm123_vm4, %v1013_v40, 0.0  ;;  %v1551_v40 = vld [vmem:[%s2175_s4 + $0x8] sm:$0x1] }
 0x767   :  { %v1008_v44 = vadd.f32 %v1007_v41, %v1006_v39  ;;  %v1015_v45 = vrot.slane %v1014_v43, 4 }
 0x769   :  { %v1009_v46 = vrot.slane %v1008_v44, 2  ;;  %v1016_v47 = vadd.f32 %v1015_v45, %v1014_v43 }
 0x76b   :  { %v1010_v48 = vadd.f32 %v1009_v46, %v1008_v44  ;;  %v1017_v49 = vrot.slane %v1016_v47, 2 }
 0x76d   :  { %v1011_v50 = vrot.slane %v1010_v48, 1  ;;  %v1018_v51 = vadd.f32 %v1017_v49, %v1016_v47  ;;  %v1302_v49 = vld [vmem:[#allocation2 + $0x1d0] sm:$0xff] }
 0x76f   :  { %v1012_v52 = vadd.f32 %v1011_v50, %v1010_v48  ;;  %v1019_v53 = vrot.slane %v1018_v51, 1  ;;  %v1303_v48 = vld [vmem:[#allocation2 + $0x1d8] sm:$0x1f]  ;;  %v1301_v50 = vld [vmem:[#allocation2 + $0x1c8] sm:$0xff] }
 0x771   :  { %v1020_v54 = vadd.f32 %v1019_v53, %v1018_v51  ;;  %v1021_v55 = vmul.f32 0.125, %v1012_v52  ;;  %v1300_v51 = vld [vmem:[#allocation2 + $0x1c0] sm:$0xff]  ;;  %v1299_v52 = vld [vmem:[#allocation2 + $0x1b8] sm:$0xff]  ;;  %v1298_v53 = vld [vmem:[#allocation2 + $0x1b0] sm:$0xff] }
 0x773   :  { %v1022_v56 = vmul.f32 0.125, %v1020_v54  ;;  %v1023_v57 = vmul.f32 %v1021_v55, %v1021_v55 }
 0x775   :  { %v1024_v58 = vsub.f32 %v1022_v56, %v1023_v57 }
 0x777   :  { %v1025_v59 = vadd.f32 1e-05, %v1024_v58 }
 0x779   :  { %1834 = vrsqrt.f32 %v1025_v59 }
 0x786   :  { %v1835_v61 = vpop.eup %1834 }
 0x787   :  { %v1027_v62 = vmul.f32 %v1835_v61, %v1546_v60 }
 0x789   :  { %v1028_v1 = vmul.f32 %v1027_v62, %v1021_v55  ;;  %v1034_v2 = vrot.slane %v1027_v62, %v1943_v35 }
 0x78b   :  { %v1029_v3 = vsub.f32 %v1547_v63, %v1028_v1  ;;  %v1036_v4 = vmul.f32 %v1034_v2, %v998_v38 }
 0x78d   :  { %v1041_v5 = vrot.slane %v1029_v3, %v1943_v35 }
 0x78f   :  { %v1043_v6 = vadd.f32 %v1041_v5, %v1036_v4 }
 0x791   :  { %v1044_v7 = vmax.f32 %v1043_v6, 0.0 }
 0x793   :  { %1768 = vmatmul.mubr.msk.f32.vlgmr.msra.gmra.mxu0 %vm123_vm4, %v1044_v7 }
 0x794   :  { %1797 = vmatprep.mubr.msk.f32.mxu0 %vm1868_vm0, %v1867_v0  ;;  %1786 = vmatpush3.msk.msra.mxu0 %vm172_vm3, %v1303_v48 }
 0x795   :  { %1787 = vmatprep.subr.mxu0 %v1867_v0 }
 0x796   :  { %1788 = vmatpush3.msra.mxu0 %v1302_v49 }
 0x797   :  { %1789 = vmatprep.subr.mxu0 %v1867_v0 }
 0x798   :  { %1790 = vmatpush3.msra.mxu0 %v1301_v50 }
 0x799   :  { %1791 = vmatprep.subr.mxu0 %v1867_v0 }
 0x79a   :  { %1792 = vmatpush3.msra.mxu0 %v1300_v51 }
 0x79b   :  { %1793 = vmatprep.subr.mxu0 %v1867_v0 }
 0x79c   :  { %1794 = vmatpush3.msra.mxu0 %v1299_v52  ;;  %v1558_v52 = vld [vmem:[%s2174_s3 + $0xa] sm:$0x1] }
 0x79d   :  { %1795 = vmatprep.subr.mxu0 %v1867_v0 }
 0x79e   :  { %1796 = vmatpush3.msra.mxu0 %v1298_v53 }
 0x853   :  { %v1124_v14 = vpop.f32.mrf.mxu0 }
 0x854   :  { %v1132_v15 = vsel %vm123_vm4, %v1124_v14, 0.0  ;;  %v1139_v16 = vmul.f32 %v1124_v14, %v1124_v14 }
 0x855   :  { %v1133_v17 = vrot.slane %v1132_v15, 4  ;;  %v1769_v18 = vpop.f32.mrf.mxu0 }
 0x856   :  { %v1140_v19 = vsel %vm123_vm4, %v1139_v16, 0.0  ;;  %v1555_v16 = vld [vmem:[%s2175_s4 + $0x9] sm:$0x1] }
 0x857   :  { %v1134_v20 = vadd.f32 %v1133_v17, %v1132_v15  ;;  %v1141_v21 = vrot.slane %v1140_v19, 4 }
 0x859   :  { %v1135_v22 = vrot.slane %v1134_v20, 2  ;;  %v1142_v23 = vadd.f32 %v1141_v21, %v1140_v19 }
 0x85b   :  { %v1136_v24 = vadd.f32 %v1135_v22, %v1134_v20  ;;  %v1143_v25 = vrot.slane %v1142_v23, 2 }
 0x85d   :  { %v1137_v26 = vrot.slane %v1136_v24, 1  ;;  %v1144_v27 = vadd.f32 %v1143_v25, %v1142_v23  ;;  %v1427_v25 = vld [vmem:[%s2176_s5 + $0x20] sm:$0xff] }
 0x85f   :  { %v1138_v28 = vadd.f32 %v1137_v26, %v1136_v24  ;;  %v1145_v29 = vrot.slane %v1144_v27, 1  ;;  %v1428_v24 = vld [vmem:[%s2176_s5 + $0x28] sm:$0x1f]  ;;  %v1426_v26 = vld [vmem:[%s2176_s5 + $0x18] sm:$0xff] }
 0x861   :  { %v1146_v30 = vadd.f32 %v1145_v29, %v1144_v27  ;;  %v1147_v31 = vmul.f32 0.125, %v1138_v28  ;;  %v1425_v27 = vld [vmem:[%s2176_s5 + $0x10] sm:$0xff]  ;;  %v1424_v28 = vld [vmem:[%s2176_s5 + $0x8] sm:$0xff]  ;;  %v1423_v29 = vld [vmem:[%s2176_s5] sm:$0xff] }
 0x863   :  { %v1148_v32 = vmul.f32 0.125, %v1146_v30  ;;  %v1149_v33 = vmul.f32 %v1147_v31, %v1147_v31 }
 0x865   :  { %v1150_v34 = vsub.f32 %v1148_v32, %v1149_v33 }
 0x867   :  { %v1151_v36 = vadd.f32 1e-05, %v1150_v34 }
 0x869   :  { %1836 = vrsqrt.f32 %v1151_v36 }
 0x876   :  { %v1837_v38 = vpop.eup %1836 }
 0x877   :  { %v1153_v39 = vmul.f32 %v1837_v38, %v1550_v37 }
 0x879   :  { %v1154_v41 = vmul.f32 %v1153_v39, %v1147_v31  ;;  %v1160_v42 = vrot.slane %v1153_v39, %v1943_v35 }
 0x87b   :  { %v1155_v43 = vsub.f32 %v1551_v40, %v1154_v41  ;;  %v1162_v44 = vmul.f32 %v1160_v42, %v1124_v14 }
 0x87d   :  { %v1167_v45 = vrot.slane %v1155_v43, %v1943_v35 }
 0x87f   :  { %v1169_v46 = vadd.f32 %v1167_v45, %v1162_v44 }
 0x881   :  { %v1170_v47 = vmax.f32 %v1169_v46, 0.0 }
 0x883   :  { %1783 = vmatmul.mubr.msk.f32.vlgmr.msra.gmra.mxu1 %vm123_vm4, %v1170_v47 }
 0x884   :  { %1812 = vmatprep.mubr.msk.f32.mxu1 %vm1868_vm0, %v1867_v0  ;;  %1801 = vmatpush3.msk.msra.mxu1 %vm172_vm3, %v1428_v24 }
 0x885   :  { %1802 = vmatprep.subr.mxu1 %v1867_v0 }
 0x886   :  { %1803 = vmatpush3.msra.mxu1 %v1427_v25 }
 0x887   :  { %1804 = vmatprep.subr.mxu1 %v1867_v0 }
 0x888   :  { %1805 = vmatpush3.msra.mxu1 %v1426_v26 }
 0x889   :  { %1806 = vmatprep.subr.mxu1 %v1867_v0 }
 0x88a   :  { %1807 = vmatpush3.msra.mxu1 %v1425_v27 }
 0x88b   :  { %1808 = vmatprep.subr.mxu1 %v1867_v0 }
 0x88c   :  { %1809 = vmatpush3.msra.mxu1 %v1424_v28 }
 0x88d   :  { %1810 = vmatprep.subr.mxu1 %v1867_v0 }
 0x88e   :  { %1811 = vmatpush3.msra.mxu1 %v1423_v29 }
 0x943   :  { %v1250_v54 = vpop.f32.mrf.mxu1 }
 0x944   :  { %v1258_v55 = vsel %vm123_vm4, %v1250_v54, 0.0  ;;  %v1265_v56 = vmul.f32 %v1250_v54, %v1250_v54 }
 0x945   :  { %v1259_v57 = vrot.slane %v1258_v55, 4  ;;  %v1784_v58 = vpop.f32.mrf.mxu1 }
 0x946   :  { %v1266_v59 = vsel %vm123_vm4, %v1265_v56, 0.0 }
 0x947   :  { %v1260_v60 = vadd.f32 %v1259_v57, %v1258_v55  ;;  %v1267_v61 = vrot.slane %v1266_v59, 4  ;;  %v1559_v55 = vld [vmem:[%s2175_s4 + $0xa] sm:$0x1] }
 0x949   :  { %v1261_v62 = vrot.slane %v1260_v60, 2  ;;  %v1268_v63 = vadd.f32 %v1267_v61, %v1266_v59 }
 0x94b   :  { %v1262_v1 = vadd.f32 %v1261_v62, %v1260_v60  ;;  %v1269_v2 = vrot.slane %v1268_v63, 2 }
 0x94d   :  { %v1263_v3 = vrot.slane %v1262_v1, 1  ;;  %v1270_v4 = vadd.f32 %v1269_v2, %v1268_v63  ;;  %v1560_v63 = vld [vmem:[%s2177_s6] ss:$0 sm:$0xff] }
 0x94f   :  { %v1264_v5 = vadd.f32 %v1263_v3, %v1262_v1  ;;  %v1271_v6 = vrot.slane %v1270_v4, 1 }
 0x951   :  { %v1272_v7 = vadd.f32 %v1271_v6, %v1270_v4  ;;  %v1273_v8 = vmul.f32 0.125, %v1264_v5 }
 0x953   :  { %v1274_v9 = vmul.f32 0.125, %v1272_v7  ;;  %v1275_v10 = vmul.f32 %v1273_v8, %v1273_v8 }
 0x955   :  { %v1276_v11 = vsub.f32 %v1274_v9, %v1275_v10 }
 0x957   :  { %v1277_v12 = vadd.f32 1e-05, %v1276_v11 }
 0x959   :  { %1838 = vrsqrt.f32 %v1277_v12 }
 0x966   :  { %v1839_v14 = vpop.eup %1838 }
 0x967   :  { %v1279_v15 = vmul.f32 %v1839_v14, %v1554_v13 }
 0x969   :  { %v1280_v17 = vmul.f32 %v1279_v15, %v1273_v8  ;;  %v1286_v18 = vrot.slane %v1279_v15, %v1943_v35 }
 0x96b   :  { %v1281_v19 = vsub.f32 %v1555_v16, %v1280_v17  ;;  %v1288_v20 = vmul.f32 %v1286_v18, %v1250_v54 }
 0x96d   :  { %v1293_v21 = vrot.slane %v1281_v19, %v1943_v35 }
 0x96f   :  { %v1295_v22 = vadd.f32 %v1293_v21, %v1288_v20 }
 0x971   :  { %v1296_v23 = vmax.f32 %v1295_v22, 0.0 }
 0x973   :  { %1798 = vmatmul.mubr.msk.f32.vlgmr.msra.gmra.mxu0 %vm123_vm4, %v1296_v23 }
 0xa33   :  { %v1376_v30 = vpop.f32.mrf.mxu0 }
 0xa34   :  { %v1384_v31 = vsel %vm123_vm4, %v1376_v30, 0.0  ;;  %v1391_v32 = vmul.f32 %v1376_v30, %v1376_v30 }
 0xa35   :  { %v1385_v33 = vrot.slane %v1384_v31, 4  ;;  %v1799_v34 = vpop.f32.mrf.mxu0 }
 0xa36   :  { %v1392_v36 = vsel %vm123_vm4, %v1391_v32, 0.0 }
 0xa37   :  { %v1386_v37 = vadd.f32 %v1385_v33, %v1384_v31  ;;  %v1393_v38 = vrot.slane %v1392_v36, 4 }
 0xa39   :  { %v1387_v39 = vrot.slane %v1386_v37, 2  ;;  %v1394_v40 = vadd.f32 %v1393_v38, %v1392_v36 }
 0xa3b   :  { %v1388_v41 = vadd.f32 %v1387_v39, %v1386_v37  ;;  %v1395_v42 = vrot.slane %v1394_v40, 2 }
 0xa3d   :  { %v1389_v0 = vrot.slane %v1388_v41, 1  ;;  %v1396_v43 = vadd.f32 %v1395_v42, %v1394_v40 }
 0xa3f   :  { %v1390_v44 = vadd.f32 %v1389_v0, %v1388_v41  ;;  %v1397_v45 = vrot.slane %v1396_v43, 1 }
 0xa41   :  { %v1398_v46 = vadd.f32 %v1397_v45, %v1396_v43  ;;  %v1399_v47 = vmul.f32 0.125, %v1390_v44 }
 0xa43   :  { %v1400_v48 = vmul.f32 0.125, %v1398_v46  ;;  %v1401_v49 = vmul.f32 %v1399_v47, %v1399_v47 }
 0xa45   :  { %v1402_v50 = vsub.f32 %v1400_v48, %v1401_v49 }
 0xa47   :  { %v1403_v51 = vadd.f32 1e-05, %v1402_v50 }
 0xa49   :  { %1840 = vrsqrt.f32 %v1403_v51 }
 0xa56   :  { %v1841_v53 = vpop.eup %1840 }
 0xa57   :  { %v1405_v54 = vmul.f32 %v1841_v53, %v1558_v52 }
 0xa59   :  { %v1406_v56 = vmul.f32 %v1405_v54, %v1399_v47  ;;  %v1412_v57 = vrot.slane %v1405_v54, %v1943_v35 }
 0xa5b   :  { %v1407_v58 = vsub.f32 %v1559_v55, %v1406_v56  ;;  %v1414_v59 = vmul.f32 %v1412_v57, %v1376_v30 }
 0xa5d   :  { %v1419_v60 = vrot.slane %v1407_v58, %v1943_v35 }
 0xa5f   :  { %v1421_v61 = vadd.f32 %v1419_v60, %v1414_v59 }
 0xa61   :  { %v1422_v62 = vmax.f32 %v1421_v61, 0.0 }
 0xa63   :  { %1813 = vmatmul.mubr.msk.f32.vlgmr.msra.gmra.mxu1 %vm123_vm4, %v1422_v62 }
 0xb23   :  { %v1508_v1 = vpop.f32.mrf.mxu1 }
 0xb24   :  { %v1509_v2 = vadd.f32 %v1560_v63, %v1508_v1 }
 0xb25   :  { %v1814_v3 = vpop.f32.mrf.mxu1 }
 0xb26   :  { %1512 = vst [vmem:[%s2178_s7] sm:$0xff] %v1509_v2 }
 0xb27   :  { %1517 = vsyncpa [#allocation3], 1 }

</bundles_post_ra>
